<compile_context>
chip_gen: v7x
topology: tpu7x:2x2x1
jax: 0.10.0
libtpu: 0.0.40
codegen_flags: <defaults>
</compile_context>

<pallas_src>
import jax
import jax.numpy as jnp
from jax import lax
from jax.experimental import pallas as pl
from jax.experimental.pallas import tpu as pltpu


def lstm_kernel(seq_ref, w_ih_ref, w_hh_ref, b_ref, w_out_ref, b_out_ref,
                out_ref):
    # seq_ref:   (L, Bt, In)  f32, time-major batch tile
    # w_ih_ref:  (In, 4H) bf16    w_hh_ref: (H, 4H) bf16
    # b_ref:     (1, 4H)  f32 (b_ih + b_hh fused)
    # w_out_ref: (H, out) f32     b_out_ref: (1, out) f32
    # out_ref:   (Bt, out) f32
    # Gate column layout (reordered at pack time): [ i | f | o | g ].
    L, Bt, In = seq_ref.shape
    H = w_hh_ref.shape[0]

    # Hoist the input projection out of the recurrence: one bf16 matmul
    # (f32 accumulate) for all timesteps, kept as a value -- no VMEM scratch.
    x = seq_ref[...].astype(jnp.bfloat16).reshape(L * Bt, In)
    xw = (jnp.dot(x, w_ih_ref[...], preferred_element_type=jnp.float32)
          + b_ref[...])                                       # (L*Bt, 4H)

    w_hh = w_hh_ref[...]                                      # bf16, resident
    h = jnp.zeros((Bt, H), jnp.float32)
    c = jnp.zeros((Bt, H), jnp.float32)

    # L is static and small: fully unrolled loop -> static slices of xw, and
    # h/c stay register-resident on the serial dependence chain.
    for t in range(L):
        gates = xw[t * Bt:(t + 1) * Bt, :] + jnp.dot(
            h.astype(jnp.bfloat16), w_hh,
            preferred_element_type=jnp.float32)               # (Bt, 4H)
        # One fused sigmoid sweep over (i, f, o); one tanh for g.
        sig = jax.nn.sigmoid(gates[:, :3 * H])
        i_g = sig[:, 0 * H:1 * H]
        f_g = sig[:, 1 * H:2 * H]
        o_g = sig[:, 2 * H:3 * H]
        g_g = jnp.tanh(gates[:, 3 * H:4 * H])
        c = f_g * c + i_g * g_g
        h = o_g * jnp.tanh(c)

    # Linear head on the final hidden state (== pred[-1] per sequence).
    out_ref[...] = (
        jnp.dot(h, w_out_ref[...], preferred_element_type=jnp.float32)
        + b_out_ref[...]
    )


def lstm_forward_batched(seqs, packed_params, *, batch_tile=None):
    """seqs: (B, L, input_size) f32.  Returns (B, out_size) = pred[-1] per seq."""
    w_ih_t, w_hh_t, b, w_out_t, b_out = packed_params
    B, L, In = seqs.shape
    H = w_hh_t.shape[0]
    out_size = w_out_t.shape[1]

    if batch_tile is None:
        batch_tile = B if B < 128 else 128
    assert B % batch_tile == 0, (B, batch_tile)
    assert batch_tile == B or batch_tile % 8 == 0, batch_tile
    grid = (B // batch_tile,)

    # Time-major so a batch tile is a contiguous (L, Bt, In) block.
    seqs_t = jnp.transpose(seqs, (1, 0, 2))

    def const_spec(shape):
        return pl.BlockSpec(shape, lambda g, _n=len(shape): (0,) * _n)

    out = pl.pallas_call(
        lstm_kernel,
        out_shape=jax.ShapeDtypeStruct((B, out_size), jnp.float32),
        grid=grid,
        in_specs=[
            pl.BlockSpec((L, batch_tile, In), lambda g: (0, g, 0)),
            const_spec((In, 4 * H)),
            const_spec((H, 4 * H)),
            const_spec((1, 4 * H)),
            const_spec((H, out_size)),
            const_spec((1, out_size)),
        ],
        out_specs=pl.BlockSpec((batch_tile, out_size), lambda g: (g, 0)),
        compiler_params=pltpu.CompilerParams(
            dimension_semantics=("parallel",)),
    )(seqs_t, w_ih_t, w_hh_t, b, w_out_t, b_out)
    return out


def lstm_forward(seq, packed_params):
    """Single sequence (L, input_size) -> (out_size,), == the module's forward."""
    return lstm_forward_batched(seq[None], packed_params)[0]


def init_torch_weights(key, input_size=8, hidden_size=128, out_size=1):
    """Synthetic weights in PyTorch nn.LSTM layout / gate order (i, f, g, o)."""
    k = jax.random.split(key, 6)
    bound = 1.0 / jnp.sqrt(hidden_size)
    w_ih = jax.random.uniform(k[0], (4 * hidden_size, input_size),
                              jnp.float32, -bound, bound)
    w_hh = jax.random.uniform(k[1], (4 * hidden_size, hidden_size),
                              jnp.float32, -bound, bound)
    b_ih = jax.random.uniform(k[2], (4 * hidden_size,), jnp.float32,
                              -bound, bound)
    b_hh = jax.random.uniform(k[3], (4 * hidden_size,), jnp.float32,
                              -bound, bound)
    w_out = jax.random.uniform(k[4], (out_size, hidden_size), jnp.float32,
                               -bound, bound)
    b_out = jax.random.uniform(k[5], (out_size,), jnp.float32, -bound, bound)
    return (w_ih, w_hh, b_ih, b_hh, w_out, b_out)


def pack_params(torch_weights):
    """Reorder gates (i,f,g,o)->(i,f,o,g), transpose, fuse biases, bf16 weights."""
    w_ih, w_hh, b_ih, b_hh, w_out, b_out = torch_weights
    H = w_hh.shape[1]
    perm = jnp.concatenate([
        jnp.arange(0, H),            # i
        jnp.arange(H, 2 * H),        # f
        jnp.arange(3 * H, 4 * H),    # o
        jnp.arange(2 * H, 3 * H),    # g
    ])
    return (
        jnp.asarray(w_ih[perm].T, jnp.bfloat16),                 # (In, 4H)
        jnp.asarray(w_hh[perm].T, jnp.bfloat16),                 # (H, 4H)
        jnp.asarray((b_ih + b_hh)[perm].reshape(1, 4 * H),
                    jnp.float32),                                # (1, 4H)
        jnp.asarray(w_out.T, jnp.float32),                       # (H, out)
        jnp.asarray(b_out.reshape(1, -1), jnp.float32),          # (1, out)
    )


def lstm_reference(seq, torch_weights):
    """Pure-JAX f32 reference with exact PyTorch nn.LSTM semantics (batch=1)."""
    w_ih, w_hh, b_ih, b_hh, w_out, b_out = torch_weights
    H = w_hh.shape[1]
    h = jnp.zeros((1, H), jnp.float32)
    c = jnp.zeros((1, H), jnp.float32)

    def step(carry, x_t):
        h, c = carry
        gates = x_t[None, :] @ w_ih.T + b_ih + h @ w_hh.T + b_hh
        i = jax.nn.sigmoid(gates[:, 0 * H:1 * H])
        f = jax.nn.sigmoid(gates[:, 1 * H:2 * H])
        g = jnp.tanh(gates[:, 2 * H:3 * H])
        o = jax.nn.sigmoid(gates[:, 3 * H:4 * H])
        c = f * c + i * g
        h = o * jnp.tanh(c)
        return (h, c), None

    (h, c), _ = lax.scan(step, (h, c), seq)
    return (h @ w_out.T + b_out).reshape(-1)


if __name__ == "__main__":
    key = jax.random.PRNGKey(0)
    k_param, k_data = jax.random.split(key)

    input_size, hidden_size, out_size, seq_len, batch = 8, 128, 1, 8, 16
    torch_weights = init_torch_weights(k_param, input_size, hidden_size,
                                       out_size)
    packed = pack_params(torch_weights)

    seqs = jax.random.normal(k_data, (batch, seq_len, input_size), jnp.float32)

    # Batched path (exercises the grid over batch tiles).
    out = jax.block_until_ready(lstm_forward_batched(seqs, packed,
                                                     batch_tile=8))
    ref = jax.block_until_ready(
        jax.vmap(lambda s: lstm_reference(s, torch_weights))(seqs))
    assert out.shape == (batch, out_size)
    # bf16 MXU operands (f32 accumulate): tolerance loosened vs. the f32 path.
    assert jnp.allclose(out, ref, atol=2e-2, rtol=2e-2), (out, ref)

    # Single-sequence path (== the PyTorch module's forward on one seq).
    out1 = jax.block_until_ready(lstm_forward(seqs[0], packed))
    assert out1.shape == (out_size,)
    assert jnp.allclose(out1, ref[0], atol=2e-2, rtol=2e-2), (out1, ref[0])

    print("KERNEL_OK")
</pallas_src>

<mosaic_0001>
module attributes {stable_mosaic.version = 11 : i64} {
  func.func @lstm_kernel(%arg0: i32, %arg1: memref<8x8x8xf32, #tpu.memory_space<vmem>>, %arg2: memref<8x512xbf16, #tpu.memory_space<vmem>>, %arg3: memref<128x512xbf16, #tpu.memory_space<vmem>>, %arg4: memref<1x512xf32, #tpu.memory_space<vmem>>, %arg5: memref<128x1xf32, #tpu.memory_space<vmem>>, %arg6: memref<1x1xf32, #tpu.memory_space<vmem>>, %arg7: memref<8x1xf32, #tpu.memory_space<vmem>>) attributes {dimension_semantics = [#tpu.dimension_semantics<parallel>], iteration_bounds = array<i64: 2>, scalar_prefetch = 0 : i64, scratch_operands = 0 : i64, tpu.core_type = #tpu.core_type<tc>, window_params = [{transform_indices = @transform_0, window_bounds = array<i64: 8, 8, 8>}, {pipeline_mode = #tpu.pipeline_mode<synchronous>, transform_indices = @transform_1, window_bounds = array<i64: 8, 512>}, {pipeline_mode = #tpu.pipeline_mode<synchronous>, transform_indices = @transform_2, window_bounds = array<i64: 128, 512>}, {pipeline_mode = #tpu.pipeline_mode<synchronous>, transform_indices = @transform_3, window_bounds = array<i64: 1, 512>}, {pipeline_mode = #tpu.pipeline_mode<synchronous>, transform_indices = @transform_4, window_bounds = array<i64: 128, 1>}, {pipeline_mode = #tpu.pipeline_mode<synchronous>, transform_indices = @transform_5, window_bounds = array<i64: 1, 1>}, {transform_indices = @transform_6, window_bounds = array<i64: 8, 1>}]} {
    %c0 = arith.constant 0 : index
    %c0_0 = arith.constant 0 : index
    %c0_1 = arith.constant 0 : index
    %0 = vector.load %arg1[%c0, %c0_0, %c0_1] : memref<8x8x8xf32, #tpu.memory_space<vmem>>, vector<8x8x8xf32>
    %1 = arith.truncf %0 : vector<8x8x8xf32> to vector<8x8x8xbf16>
    %2 = vector.shape_cast %1 : vector<8x8x8xbf16> to vector<64x8xbf16>
    %c0_2 = arith.constant 0 : index
    %c0_3 = arith.constant 0 : index
    %3 = vector.load %arg2[%c0_2, %c0_3] : memref<8x512xbf16, #tpu.memory_space<vmem>>, vector<8x512xbf16>
    %cst = arith.constant dense<0.000000e+00> : vector<64x512xf32>
    %4 = tpu.matmul %2, %3, %cst {dimension_numbers = #tpu.dot_dimension_numbers<[1], [0], [0], [1], [0, 0, 1, 1], [], []>} : vector<64x8xbf16>, vector<8x512xbf16>, vector<64x512xf32> -> vector<64x512xf32>
    %c0_4 = arith.constant 0 : index
    %c0_5 = arith.constant 0 : index
    %5 = vector.load %arg4[%c0_4, %c0_5] : memref<1x512xf32, #tpu.memory_space<vmem>>, vector<1x512xf32>
    %6 = vector.broadcast %5 : vector<1x512xf32> to vector<64x512xf32>
    %7 = arith.addf %4, %6 : vector<64x512xf32>
    %c0_6 = arith.constant 0 : index
    %c0_7 = arith.constant 0 : index
    %8 = vector.load %arg3[%c0_6, %c0_7] : memref<128x512xbf16, #tpu.memory_space<vmem>>, vector<128x512xbf16>
    %cst_8 = arith.constant 0.000000e+00 : f32
    %9 = vector.broadcast %cst_8 : f32 to vector<8x128xf32>
    %cst_9 = arith.constant 0.000000e+00 : f32
    %10 = vector.broadcast %cst_9 : f32 to vector<8x128xf32>
    %11 = vector.extract_strided_slice %7 {offsets = [0, 0], sizes = [8, 512], strides = [1, 1]} : vector<64x512xf32> to vector<8x512xf32>
    %12 = arith.truncf %9 : vector<8x128xf32> to vector<8x128xbf16>
    %cst_10 = arith.constant dense<0.000000e+00> : vector<8x512xf32>
    %13 = tpu.matmul %12, %8, %cst_10 {dimension_numbers = #tpu.dot_dimension_numbers<[1], [0], [0], [1], [0, 0, 1, 1], [], []>} : vector<8x128xbf16>, vector<128x512xbf16>, vector<8x512xf32> -> vector<8x512xf32>
    %14 = arith.addf %11, %13 : vector<8x512xf32>
    %15 = vector.extract_strided_slice %14 {offsets = [0, 0], sizes = [8, 384], strides = [1, 1]} : vector<8x512xf32> to vector<8x384xf32>
    %16 = arith.negf %15 : vector<8x384xf32>
    %17 = math.exp %16 : vector<8x384xf32>
    %cst_11 = arith.constant 1.000000e+00 : f32
    %18 = vector.broadcast %cst_11 : f32 to vector<8x384xf32>
    %19 = arith.addf %18, %17 : vector<8x384xf32>
    %20 = arith.divf %18, %19 : vector<8x384xf32>
    %21 = vector.extract_strided_slice %20 {offsets = [0, 0], sizes = [8, 128], strides = [1, 1]} : vector<8x384xf32> to vector<8x128xf32>
    %22 = vector.extract_strided_slice %20 {offsets = [0, 128], sizes = [8, 128], strides = [1, 1]} : vector<8x384xf32> to vector<8x128xf32>
    %23 = vector.extract_strided_slice %20 {offsets = [0, 256], sizes = [8, 128], strides = [1, 1]} : vector<8x384xf32> to vector<8x128xf32>
    %24 = vector.extract_strided_slice %14 {offsets = [0, 384], sizes = [8, 128], strides = [1, 1]} : vector<8x512xf32> to vector<8x128xf32>
    %25 = math.tanh %24 : vector<8x128xf32>
    %26 = arith.mulf %22, %10 : vector<8x128xf32>
    %27 = arith.mulf %21, %25 : vector<8x128xf32>
    %28 = arith.addf %26, %27 : vector<8x128xf32>
    %29 = math.tanh %28 : vector<8x128xf32>
    %30 = arith.mulf %23, %29 : vector<8x128xf32>
    %31 = vector.extract_strided_slice %7 {offsets = [8, 0], sizes = [8, 512], strides = [1, 1]} : vector<64x512xf32> to vector<8x512xf32>
    %32 = arith.truncf %30 : vector<8x128xf32> to vector<8x128xbf16>
    %cst_12 = arith.constant dense<0.000000e+00> : vector<8x512xf32>
    %33 = tpu.matmul %32, %8, %cst_12 {dimension_numbers = #tpu.dot_dimension_numbers<[1], [0], [0], [1], [0, 0, 1, 1], [], []>} : vector<8x128xbf16>, vector<128x512xbf16>, vector<8x512xf32> -> vector<8x512xf32>
    %34 = arith.addf %31, %33 : vector<8x512xf32>
    %35 = vector.extract_strided_slice %34 {offsets = [0, 0], sizes = [8, 384], strides = [1, 1]} : vector<8x512xf32> to vector<8x384xf32>
    %36 = arith.negf %35 : vector<8x384xf32>
    %37 = math.exp %36 : vector<8x384xf32>
    %cst_13 = arith.constant 1.000000e+00 : f32
    %38 = vector.broadcast %cst_13 : f32 to vector<8x384xf32>
    %39 = arith.addf %38, %37 : vector<8x384xf32>
    %40 = arith.divf %38, %39 : vector<8x384xf32>
    %41 = vector.extract_strided_slice %40 {offsets = [0, 0], sizes = [8, 128], strides = [1, 1]} : vector<8x384xf32> to vector<8x128xf32>
    %42 = vector.extract_strided_slice %40 {offsets = [0, 128], sizes = [8, 128], strides = [1, 1]} : vector<8x384xf32> to vector<8x128xf32>
    %43 = vector.extract_strided_slice %40 {offsets = [0, 256], sizes = [8, 128], strides = [1, 1]} : vector<8x384xf32> to vector<8x128xf32>
    %44 = vector.extract_strided_slice %34 {offsets = [0, 384], sizes = [8, 128], strides = [1, 1]} : vector<8x512xf32> to vector<8x128xf32>
    %45 = math.tanh %44 : vector<8x128xf32>
    %46 = arith.mulf %42, %28 : vector<8x128xf32>
    %47 = arith.mulf %41, %45 : vector<8x128xf32>
    %48 = arith.addf %46, %47 : vector<8x128xf32>
    %49 = math.tanh %48 : vector<8x128xf32>
    %50 = arith.mulf %43, %49 : vector<8x128xf32>
    %51 = vector.extract_strided_slice %7 {offsets = [16, 0], sizes = [8, 512], strides = [1, 1]} : vector<64x512xf32> to vector<8x512xf32>
    %52 = arith.truncf %50 : vector<8x128xf32> to vector<8x128xbf16>
    %cst_14 = arith.constant dense<0.000000e+00> : vector<8x512xf32>
    %53 = tpu.matmul %52, %8, %cst_14 {dimension_numbers = #tpu.dot_dimension_numbers<[1], [0], [0], [1], [0, 0, 1, 1], [], []>} : vector<8x128xbf16>, vector<128x512xbf16>, vector<8x512xf32> -> vector<8x512xf32>
    %54 = arith.addf %51, %53 : vector<8x512xf32>
    %55 = vector.extract_strided_slice %54 {offsets = [0, 0], sizes = [8, 384], strides = [1, 1]} : vector<8x512xf32> to vector<8x384xf32>
    %56 = arith.negf %55 : vector<8x384xf32>
    %57 = math.exp %56 : vector<8x384xf32>
    %cst_15 = arith.constant 1.000000e+00 : f32
    %58 = vector.broadcast %cst_15 : f32 to vector<8x384xf32>
    %59 = arith.addf %58, %57 : vector<8x384xf32>
    %60 = arith.divf %58, %59 : vector<8x384xf32>
    %61 = vector.extract_strided_slice %60 {offsets = [0, 0], sizes = [8, 128], strides = [1, 1]} : vector<8x384xf32> to vector<8x128xf32>
    %62 = vector.extract_strided_slice %60 {offsets = [0, 128], sizes = [8, 128], strides = [1, 1]} : vector<8x384xf32> to vector<8x128xf32>
    %63 = vector.extract_strided_slice %60 {offsets = [0, 256], sizes = [8, 128], strides = [1, 1]} : vector<8x384xf32> to vector<8x128xf32>
    %64 = vector.extract_strided_slice %54 {offsets = [0, 384], sizes = [8, 128], strides = [1, 1]} : vector<8x512xf32> to vector<8x128xf32>
    %65 = math.tanh %64 : vector<8x128xf32>
    %66 = arith.mulf %62, %48 : vector<8x128xf32>
    %67 = arith.mulf %61, %65 : vector<8x128xf32>
    %68 = arith.addf %66, %67 : vector<8x128xf32>
    %69 = math.tanh %68 : vector<8x128xf32>
    %70 = arith.mulf %63, %69 : vector<8x128xf32>
    %71 = vector.extract_strided_slice %7 {offsets = [24, 0], sizes = [8, 512], strides = [1, 1]} : vector<64x512xf32> to vector<8x512xf32>
    %72 = arith.truncf %70 : vector<8x128xf32> to vector<8x128xbf16>
    %cst_16 = arith.constant dense<0.000000e+00> : vector<8x512xf32>
    %73 = tpu.matmul %72, %8, %cst_16 {dimension_numbers = #tpu.dot_dimension_numbers<[1], [0], [0], [1], [0, 0, 1, 1], [], []>} : vector<8x128xbf16>, vector<128x512xbf16>, vector<8x512xf32> -> vector<8x512xf32>
    %74 = arith.addf %71, %73 : vector<8x512xf32>
    %75 = vector.extract_strided_slice %74 {offsets = [0, 0], sizes = [8, 384], strides = [1, 1]} : vector<8x512xf32> to vector<8x384xf32>
    %76 = arith.negf %75 : vector<8x384xf32>
    %77 = math.exp %76 : vector<8x384xf32>
    %cst_17 = arith.constant 1.000000e+00 : f32
    %78 = vector.broadcast %cst_17 : f32 to vector<8x384xf32>
    %79 = arith.addf %78, %77 : vector<8x384xf32>
    %80 = arith.divf %78, %79 : vector<8x384xf32>
    %81 = vector.extract_strided_slice %80 {offsets = [0, 0], sizes = [8, 128], strides = [1, 1]} : vector<8x384xf32> to vector<8x128xf32>
    %82 = vector.extract_strided_slice %80 {offsets = [0, 128], sizes = [8, 128], strides = [1, 1]} : vector<8x384xf32> to vector<8x128xf32>
    %83 = vector.extract_strided_slice %80 {offsets = [0, 256], sizes = [8, 128], strides = [1, 1]} : vector<8x384xf32> to vector<8x128xf32>
    %84 = vector.extract_strided_slice %74 {offsets = [0, 384], sizes = [8, 128], strides = [1, 1]} : vector<8x512xf32> to vector<8x128xf32>
    %85 = math.tanh %84 : vector<8x128xf32>
    %86 = arith.mulf %82, %68 : vector<8x128xf32>
    %87 = arith.mulf %81, %85 : vector<8x128xf32>
    %88 = arith.addf %86, %87 : vector<8x128xf32>
    %89 = math.tanh %88 : vector<8x128xf32>
    %90 = arith.mulf %83, %89 : vector<8x128xf32>
    %91 = vector.extract_strided_slice %7 {offsets = [32, 0], sizes = [8, 512], strides = [1, 1]} : vector<64x512xf32> to vector<8x512xf32>
    %92 = arith.truncf %90 : vector<8x128xf32> to vector<8x128xbf16>
    %cst_18 = arith.constant dense<0.000000e+00> : vector<8x512xf32>
    %93 = tpu.matmul %92, %8, %cst_18 {dimension_numbers = #tpu.dot_dimension_numbers<[1], [0], [0], [1], [0, 0, 1, 1], [], []>} : vector<8x128xbf16>, vector<128x512xbf16>, vector<8x512xf32> -> vector<8x512xf32>
    %94 = arith.addf %91, %93 : vector<8x512xf32>
    %95 = vector.extract_strided_slice %94 {offsets = [0, 0], sizes = [8, 384], strides = [1, 1]} : vector<8x512xf32> to vector<8x384xf32>
    %96 = arith.negf %95 : vector<8x384xf32>
    %97 = math.exp %96 : vector<8x384xf32>
    %cst_19 = arith.constant 1.000000e+00 : f32
    %98 = vector.broadcast %cst_19 : f32 to vector<8x384xf32>
    %99 = arith.addf %98, %97 : vector<8x384xf32>
    %100 = arith.divf %98, %99 : vector<8x384xf32>
    %101 = vector.extract_strided_slice %100 {offsets = [0, 0], sizes = [8, 128], strides = [1, 1]} : vector<8x384xf32> to vector<8x128xf32>
    %102 = vector.extract_strided_slice %100 {offsets = [0, 128], sizes = [8, 128], strides = [1, 1]} : vector<8x384xf32> to vector<8x128xf32>
    %103 = vector.extract_strided_slice %100 {offsets = [0, 256], sizes = [8, 128], strides = [1, 1]} : vector<8x384xf32> to vector<8x128xf32>
    %104 = vector.extract_strided_slice %94 {offsets = [0, 384], sizes = [8, 128], strides = [1, 1]} : vector<8x512xf32> to vector<8x128xf32>
    %105 = math.tanh %104 : vector<8x128xf32>
    %106 = arith.mulf %102, %88 : vector<8x128xf32>
    %107 = arith.mulf %101, %105 : vector<8x128xf32>
    %108 = arith.addf %106, %107 : vector<8x128xf32>
    %109 = math.tanh %108 : vector<8x128xf32>
    %110 = arith.mulf %103, %109 : vector<8x128xf32>
    %111 = vector.extract_strided_slice %7 {offsets = [40, 0], sizes = [8, 512], strides = [1, 1]} : vector<64x512xf32> to vector<8x512xf32>
    %112 = arith.truncf %110 : vector<8x128xf32> to vector<8x128xbf16>
    %cst_20 = arith.constant dense<0.000000e+00> : vector<8x512xf32>
    %113 = tpu.matmul %112, %8, %cst_20 {dimension_numbers = #tpu.dot_dimension_numbers<[1], [0], [0], [1], [0, 0, 1, 1], [], []>} : vector<8x128xbf16>, vector<128x512xbf16>, vector<8x512xf32> -> vector<8x512xf32>
    %114 = arith.addf %111, %113 : vector<8x512xf32>
    %115 = vector.extract_strided_slice %114 {offsets = [0, 0], sizes = [8, 384], strides = [1, 1]} : vector<8x512xf32> to vector<8x384xf32>
    %116 = arith.negf %115 : vector<8x384xf32>
    %117 = math.exp %116 : vector<8x384xf32>
    %cst_21 = arith.constant 1.000000e+00 : f32
    %118 = vector.broadcast %cst_21 : f32 to vector<8x384xf32>
    %119 = arith.addf %118, %117 : vector<8x384xf32>
    %120 = arith.divf %118, %119 : vector<8x384xf32>
    %121 = vector.extract_strided_slice %120 {offsets = [0, 0], sizes = [8, 128], strides = [1, 1]} : vector<8x384xf32> to vector<8x128xf32>
    %122 = vector.extract_strided_slice %120 {offsets = [0, 128], sizes = [8, 128], strides = [1, 1]} : vector<8x384xf32> to vector<8x128xf32>
    %123 = vector.extract_strided_slice %120 {offsets = [0, 256], sizes = [8, 128], strides = [1, 1]} : vector<8x384xf32> to vector<8x128xf32>
    %124 = vector.extract_strided_slice %114 {offsets = [0, 384], sizes = [8, 128], strides = [1, 1]} : vector<8x512xf32> to vector<8x128xf32>
    %125 = math.tanh %124 : vector<8x128xf32>
    %126 = arith.mulf %122, %108 : vector<8x128xf32>
    %127 = arith.mulf %121, %125 : vector<8x128xf32>
    %128 = arith.addf %126, %127 : vector<8x128xf32>
    %129 = math.tanh %128 : vector<8x128xf32>
    %130 = arith.mulf %123, %129 : vector<8x128xf32>
    %131 = vector.extract_strided_slice %7 {offsets = [48, 0], sizes = [8, 512], strides = [1, 1]} : vector<64x512xf32> to vector<8x512xf32>
    %132 = arith.truncf %130 : vector<8x128xf32> to vector<8x128xbf16>
    %cst_22 = arith.constant dense<0.000000e+00> : vector<8x512xf32>
    %133 = tpu.matmul %132, %8, %cst_22 {dimension_numbers = #tpu.dot_dimension_numbers<[1], [0], [0], [1], [0, 0, 1, 1], [], []>} : vector<8x128xbf16>, vector<128x512xbf16>, vector<8x512xf32> -> vector<8x512xf32>
    %134 = arith.addf %131, %133 : vector<8x512xf32>
    %135 = vector.extract_strided_slice %134 {offsets = [0, 0], sizes = [8, 384], strides = [1, 1]} : vector<8x512xf32> to vector<8x384xf32>
    %136 = arith.negf %135 : vector<8x384xf32>
    %137 = math.exp %136 : vector<8x384xf32>
    %cst_23 = arith.constant 1.000000e+00 : f32
    %138 = vector.broadcast %cst_23 : f32 to vector<8x384xf32>
    %139 = arith.addf %138, %137 : vector<8x384xf32>
    %140 = arith.divf %138, %139 : vector<8x384xf32>
    %141 = vector.extract_strided_slice %140 {offsets = [0, 0], sizes = [8, 128], strides = [1, 1]} : vector<8x384xf32> to vector<8x128xf32>
    %142 = vector.extract_strided_slice %140 {offsets = [0, 128], sizes = [8, 128], strides = [1, 1]} : vector<8x384xf32> to vector<8x128xf32>
    %143 = vector.extract_strided_slice %140 {offsets = [0, 256], sizes = [8, 128], strides = [1, 1]} : vector<8x384xf32> to vector<8x128xf32>
    %144 = vector.extract_strided_slice %134 {offsets = [0, 384], sizes = [8, 128], strides = [1, 1]} : vector<8x512xf32> to vector<8x128xf32>
    %145 = math.tanh %144 : vector<8x128xf32>
    %146 = arith.mulf %142, %128 : vector<8x128xf32>
    %147 = arith.mulf %141, %145 : vector<8x128xf32>
    %148 = arith.addf %146, %147 : vector<8x128xf32>
    %149 = math.tanh %148 : vector<8x128xf32>
    %150 = arith.mulf %143, %149 : vector<8x128xf32>
    %151 = vector.extract_strided_slice %7 {offsets = [56, 0], sizes = [8, 512], strides = [1, 1]} : vector<64x512xf32> to vector<8x512xf32>
    %152 = arith.truncf %150 : vector<8x128xf32> to vector<8x128xbf16>
    %cst_24 = arith.constant dense<0.000000e+00> : vector<8x512xf32>
    %153 = tpu.matmul %152, %8, %cst_24 {dimension_numbers = #tpu.dot_dimension_numbers<[1], [0], [0], [1], [0, 0, 1, 1], [], []>} : vector<8x128xbf16>, vector<128x512xbf16>, vector<8x512xf32> -> vector<8x512xf32>
    %154 = arith.addf %151, %153 : vector<8x512xf32>
    %155 = vector.extract_strided_slice %154 {offsets = [0, 0], sizes = [8, 384], strides = [1, 1]} : vector<8x512xf32> to vector<8x384xf32>
    %156 = arith.negf %155 : vector<8x384xf32>
    %157 = math.exp %156 : vector<8x384xf32>
    %cst_25 = arith.constant 1.000000e+00 : f32
    %158 = vector.broadcast %cst_25 : f32 to vector<8x384xf32>
    %159 = arith.addf %158, %157 : vector<8x384xf32>
    %160 = arith.divf %158, %159 : vector<8x384xf32>
    %161 = vector.extract_strided_slice %160 {offsets = [0, 0], sizes = [8, 128], strides = [1, 1]} : vector<8x384xf32> to vector<8x128xf32>
    %162 = vector.extract_strided_slice %160 {offsets = [0, 128], sizes = [8, 128], strides = [1, 1]} : vector<8x384xf32> to vector<8x128xf32>
    %163 = vector.extract_strided_slice %160 {offsets = [0, 256], sizes = [8, 128], strides = [1, 1]} : vector<8x384xf32> to vector<8x128xf32>
    %164 = vector.extract_strided_slice %154 {offsets = [0, 384], sizes = [8, 128], strides = [1, 1]} : vector<8x512xf32> to vector<8x128xf32>
    %165 = math.tanh %164 : vector<8x128xf32>
    %166 = arith.mulf %162, %148 : vector<8x128xf32>
    %167 = arith.mulf %161, %165 : vector<8x128xf32>
    %168 = arith.addf %166, %167 : vector<8x128xf32>
    %169 = math.tanh %168 : vector<8x128xf32>
    %170 = arith.mulf %163, %169 : vector<8x128xf32>
    %c0_26 = arith.constant 0 : index
    %c0_27 = arith.constant 0 : index
    %171 = vector.load %arg5[%c0_26, %c0_27] : memref<128x1xf32, #tpu.memory_space<vmem>>, vector<128x1xf32>
    %cst_28 = arith.constant dense<0.000000e+00> : vector<8x1xf32>
    %172 = tpu.matmul %170, %171, %cst_28 {dimension_numbers = #tpu.dot_dimension_numbers<[1], [0], [0], [1], [0, 0, 1, 1], [], []>} : vector<8x128xf32>, vector<128x1xf32>, vector<8x1xf32> -> vector<8x1xf32>
    %c0_29 = arith.constant 0 : index
    %c0_30 = arith.constant 0 : index
    %173 = vector.load %arg6[%c0_29, %c0_30] : memref<1x1xf32, #tpu.memory_space<vmem>>, vector<1x1xf32>
    %174 = vector.broadcast %173 : vector<1x1xf32> to vector<8x1xf32>
    %175 = arith.addf %172, %174 : vector<8x1xf32>
    %c0_31 = arith.constant 0 : index
    %c0_32 = arith.constant 0 : index
    %176 = vector.load %arg7[%c0_31, %c0_32] : memref<8x1xf32, #tpu.memory_space<vmem>>, vector<8x1xf32>
    tpu.vector_store %arg7[%c0_31, %c0_32], %175 {strides = array<i32>} : memref<8x1xf32, #tpu.memory_space<vmem>>, vector<8x1xf32>,
    return
  }
  func.func @transform_0(%arg0: i32) -> (i32, i32, i32) {
    %c0_i32 = arith.constant 0 : i32
    %c0_i32_0 = arith.constant 0 : i32
    %c0_i32_1 = arith.constant 0 : i32
    return %c0_i32, %arg0, %c0_i32_0 : i32, i32, i32
  }
  func.func @transform_1(%arg0: i32) -> (i32, i32) {
    %c0_i32 = arith.constant 0 : i32
    %c0_i32_0 = arith.constant 0 : i32
    %c0_i32_1 = arith.constant 0 : i32
    return %c0_i32, %c0_i32_0 : i32, i32
  }
  func.func @transform_2(%arg0: i32) -> (i32, i32) {
    %c0_i32 = arith.constant 0 : i32
    %c0_i32_0 = arith.constant 0 : i32
    %c0_i32_1 = arith.constant 0 : i32
    return %c0_i32, %c0_i32_0 : i32, i32
  }
  func.func @transform_3(%arg0: i32) -> (i32, i32) {
    %c0_i32 = arith.constant 0 : i32
    %c0_i32_0 = arith.constant 0 : i32
    %c0_i32_1 = arith.constant 0 : i32
    return %c0_i32, %c0_i32_0 : i32, i32
  }
  func.func @transform_4(%arg0: i32) -> (i32, i32) {
    %c0_i32 = arith.constant 0 : i32
    %c0_i32_0 = arith.constant 0 : i32
    %c0_i32_1 = arith.constant 0 : i32
    return %c0_i32, %c0_i32_0 : i32, i32
  }
  func.func @transform_5(%arg0: i32) -> (i32, i32) {
    %c0_i32 = arith.constant 0 : i32
    %c0_i32_0 = arith.constant 0 : i32
    %c0_i32_1 = arith.constant 0 : i32
    return %c0_i32, %c0_i32_0 : i32, i32
  }
  func.func @transform_6(%arg0: i32) -> (i32, i32) {
    %c0_i32 = arith.constant 0 : i32
    %c0_i32_0 = arith.constant 0 : i32
    return %arg0, %c0_i32 : i32, i32
  }
}

</mosaic_0001>

<bundles_post_ra>
// kernel: tpu_custom_call.1
= control target key start
LH: loop header
LB: loop body
LE: loop exit
PB: predicated region body
PF: predicated region fallthrough
CT: control target
= control target key end

     0   :  { %s3105_s0 = inlined_call_operand.vmem [shape: f32[8,16,8], index: 0, kind: input, shape index: {}]   ;;  %s3106_s1 = inlined_call_operand.vmem [shape: bf16[8,512], index: 1, kind: input, shape index: {}]   ;;  %s3107_s2 = inlined_call_operand.vmem [shape: bf16[128,512], index: 2, kind: input, shape index: {}]   ;;  %s3108_s3 = inlined_call_operand.vmem [shape: f32[1,512], index: 3, kind: input, shape index: {}]   ;;  %s3109_s4 = inlined_call_operand.vmem [shape: f32[128,1], index: 4, kind: input, shape index: {}]   ;;  %s3110_s5 = inlined_call_operand.<no memory space> [shape: f32[1,1], index: 5, kind: input, shape index: {}]   ;;  %s3111_s6 = inlined_call_operand.vmem [shape: f32[16,1], index: 6, kind: output, shape index: {}]  }
   0x1   :  { %v11_v0 = vstv %s3110_s5 }
   0x2   :  { %12 = vst [vmem:[#allocation2] sm:$0x1] %v11_v0 }
   0x3   :  { %s2262_s23 = smov 0   ;;  %s2264_s24 = smov 0  }
   0x4   :  { %s2266_s25 = smov 0  }
   0x5 LB: > { %s1790_s5 = sadd.s32 4294967295, %s2218_s25   ;;  %s2279_s26 = sadd.s32 1, %s2218_s25   ;;  %s2218_s25 = sphi %s2266_s25, %s3159_s25   ;;  %s2214_s24 = sphi %s2264_s24, %s3158_s24   ;;  %s2210_s23 = sphi %s2262_s23, %s3157_s23  }
   0x6   : > { %s22_s27 = ssub.s32 %s2218_s25, %s2279_s26  ;;  %s25_s28 = sadd.s32 1, %s2214_s24 }
   0x7   : > { %p23_p0 = scmp.eq.s32.totalorder %s22_s27, 0  ;;  %p32_p1 = scmp.ne.s32.totalorder %s2214_s24, %s2210_s23 }
   0x8   : > { %p33_p2 = scmp.eq.s32.totalorder %s2218_s25, 0  ;;  %p1793_p4 = scmp.ge.s32.totalorder %s2218_s25, 2 }
   0x9   : > { %s2288_s29 = scalar_select %p23_p0, %s2214_s24, %s25_s28  }
   0xa   : > { %p34_p3 = por %p33_p2, %p32_p1  ;;  %204 = sbr.rel (%p1793_p4) target bundleno = 25 (0x19), region = 36 }
  0x11   : > { %207 = sbr.rel (!%p34_p3) target bundleno = 25 (0x19), region = 40  ;;  %s209_s30 = sand.u32 (%p34_p3), 1, %s2214_s24  }
  0x12   : > { %s1795_s7 = sshll.u32 (%p34_p3), %s2218_s25, 3  ;;  %s1794_s8 = sshll.u32 (%p34_p3), %s209_s30, 6 }
  0x13   : > { %s213_s11 = scalar_lea.vmem (%p34_p3), %s3105_s0, %s1795_s7  ;;  %s211_s12 = scalar_lea.vmem (%p34_p3), [#allocation3], %s1794_s8 }
  0x14   : > { %v255_v1 = vld [vmem:[%s213_s11] sm:$0xff] (%p34_p3)  ;;  %v257_v2 = vld [vmem:[%s213_s11 + $0x10] sm:$0xff] (%p34_p3) }
  0x15   : > { %v259_v3 = vld [vmem:[%s213_s11 + $0x20] sm:$0xff] (%p34_p3)  ;;  %256 = vst [vmem:[%s211_s12] sm:$0xff] (%p34_p3), %v255_v1  ;;  %258 = vst [vmem:[%s211_s12 + $0x8] sm:$0xff] (%p34_p3), %v257_v2  ;;  %v261_v4 = vld [vmem:[%s213_s11 + $0x30] sm:$0xff] (%p34_p3) }
  0x16   : > { %260 = vst [vmem:[%s211_s12 + $0x10] sm:$0xff] (%p34_p3), %v259_v3  ;;  %v263_v5 = vld [vmem:[%s213_s11 + $0x40] sm:$0xff] (%p34_p3)  ;;  %v265_v6 = vld [vmem:[%s213_s11 + $0x50] sm:$0xff] (%p34_p3)  ;;  %262 = vst [vmem:[%s211_s12 + $0x18] sm:$0xff] (%p34_p3), %v261_v4 }
  0x17   : > { %264 = vst [vmem:[%s211_s12 + $0x20] sm:$0xff] (%p34_p3), %v263_v5  ;;  %266 = vst [vmem:[%s211_s12 + $0x28] sm:$0xff] (%p34_p3), %v265_v6  ;;  %v267_v7 = vld [vmem:[%s213_s11 + $0x60] sm:$0xff] (%p34_p3)  ;;  %v269_v8 = vld [vmem:[%s213_s11 + $0x70] sm:$0xff] (%p34_p3) }
  0x18   : > { %268 = vst [vmem:[%s211_s12 + $0x30] sm:$0xff] %v267_v7  ;;  %270 = vst [vmem:[%s211_s12 + $0x38] sm:$0xff] %v269_v8 }
  0x19 PF: > { %p1796_p5 = scmp.ge.s32.totalorder %s2218_s25, 1  ;;  %p275_p6 = scmp.lt.s32.totalorder %s2218_s25, 3 }
  0x1b   : > { %p276_p7 = pnand %p1796_p5, %p275_p6 }
  0x1d   : > { %279 = sbr.rel (%p276_p7) target bundleno = 2368 (0x940), region = 78 }
  0x24   : > { %v331_v9 = vld [vmem:[%s3106_s1] sm:$0xff]  ;;  %vm398_vm0 = vcmask 1043456   ;;  %v332_v10 = vld [vmem:[%s3106_s1 + $0x8] sm:$0xff]  ;;  %s282_s17 = sand.u32 1, %s2210_s23   ;;  %v3112_v15 = vmov 0   ;;  %vm385_vm1 = vcmask 64512   ;;  %v335_v62 = vlaneseq }
  0x25   : > { %v1804_v11 = vcombine.high %v331_v9, %v331_v9  ;;  %v1806_v12 = vcombine.high %v332_v10, %v332_v10  ;;  %v1803_v13 = vcombine.low %v331_v9, %v331_v9  ;;  %v1805_v14 = vcombine.low %v332_v10, %v332_v10  ;;  %443 = vmatprep.mubr.bf16.mxu0 %v3112_v15  ;;  %s1797_s18 = sshll.u32 %s282_s17, 6  ;;  %v2309_v16 = vld [vmem:[%s3107_s2 + $0x4] ss:$16 sps:$4 sm:$0xff]   ;;  %v2315_v17 = vld [vmem:[%s3107_s2 + $0xc] ss:$16 sps:$4 sm:$0xff]   ;;  %p310_p8 = scmp.lt.s32.totalorder %s1790_s5, 1 }
  0x26   : > { %516 = vmatprep.mubr.bf16.mxu1 %v3112_v15  ;;  %s2321_s23 = scalar_lea.vmem [#allocation3], %s1797_s18  ;;  %v2328_v22 = vld [vmem:[%s3107_s2] ss:$16 sps:$4 sm:$0xff]   ;;  %v2333_v24 = vld [vmem:[%s3107_s2 + $0x8] ss:$16 sps:$4 sm:$0xff]   ;;  %v336_v63 = vshrl.u32 %v335_v62, 7 }
  0x27   : > { %1807 = vmatprep.subr.msk.bf16.mxu0 %vm398_vm0, %v1804_v11  ;;  %1812 = vmatprep.subr.msk.bf16.mxu1 %vm398_vm0, %v1806_v12  ;;  %v400_v18 = vsel %vm398_vm0, %v1803_v13, 0  ;;  %v406_v19 = vsel %vm398_vm0, %v1805_v14, 0  ;;  %v315_v20 = vld [vmem:[%s2321_s23] sm:$0xff]  ;;  %v316_v21 = vld [vmem:[%s2321_s23 + $0x8] sm:$0xff]  ;;  %v317_v29 = vld [vmem:[%s2321_s23 + $0x10] sm:$0xff]  ;;  %vm2222_vm2 = vmmov 0  }
  0x28   : > { %412 = vmatpush1.bf16.msra.mxu0 %v400_v18  ;;  %485 = vmatpush1.bf16.msra.mxu1 %v406_v19  ;;  %v1876_v23 = vpack.c.bf16 %v316_v21, %v315_v20  ;;  %v2340_v25 = vld [vmem:[%s3107_s2 + $0x24] ss:$16 sps:$4 sm:$0xff]   ;;  %v2345_v26 = vld [vmem:[%s3107_s2 + $0x2c] ss:$16 sps:$4 sm:$0xff]   ;;  %v2350_v27 = vld [vmem:[%s3107_s2 + $0x20] ss:$16 sps:$4 sm:$0xff]  }
  0x29   : > { %749 = vmatprep.subr.bf16.mxu0 %v2309_v16  ;;  %790 = vmatprep.subr.bf16.mxu1 %v2315_v17  ;;  %v2357_v28 = vld [vmem:[%s3107_s2 + $0x28] ss:$16 sps:$4 sm:$0xff]   ;;  %v2368_v31 = vld [vmem:[%s3107_s2 + $0x44] ss:$16 sps:$4 sm:$0xff]   ;;  %v2373_v32 = vld [vmem:[%s3107_s2 + $0x4c] ss:$16 sps:$4 sm:$0xff]  }
  0x2a   : > { %v318_v30 = vld [vmem:[%s2321_s23 + $0x18] sm:$0xff]  ;;  %v2394_v36 = vld [vmem:[%s3107_s2 + $0x64] ss:$16 sps:$4 sm:$0xff]   ;;  %v320_v41 = vld [vmem:[%s2321_s23 + $0x28] sm:$0xff]  ;;  %v345_v0 = vsub.s32 2, %v336_v63  ;;  %v349_v1 = vsub.s32 3, %v336_v63 }
  0x2b   : > { %1808 = vmatmul.mubr.msk.bf16.vlgmr.msra.gmra.mrb[0].mxu0 %vm385_vm1, %v1876_v23  ;;  %1813 = vmatmul.mubr.msk.bf16.vlgmr.msra.gmra.mrb[0].mxu1 %vm385_vm1, %v1876_v23  ;;  %v1877_v33 = vpack.c.bf16 %v318_v30, %v317_v29  ;;  %v2382_v34 = vld [vmem:[%s3107_s2 + $0x40] ss:$16 sps:$4 sm:$0xff]   ;;  %v2387_v35 = vld [vmem:[%s3107_s2 + $0x48] ss:$16 sps:$4 sm:$0xff]   ;;  %v2399_v37 = vld [vmem:[%s3107_s2 + $0x6c] ss:$16 sps:$4 sm:$0xff]  }
  0x2c   : > { %750 = vmatpush1.bf16.msra.mxu0 %v2328_v22  ;;  %791 = vmatpush1.bf16.msra.mxu1 %v2333_v24  ;;  %v2404_v38 = vld [vmem:[%s3107_s2 + $0x60] ss:$16 sps:$4 sm:$0xff]   ;;  %v2409_v39 = vld [vmem:[%s3107_s2 + $0x68] ss:$16 sps:$4 sm:$0xff]   ;;  %v2420_v42 = vld [vmem:[%s3107_s2 + $0x84] ss:$16 sps:$4 sm:$0xff]  }
  0x2d   : > { %751 = vmatprep.subr.bf16.mxu0 %v2340_v25  ;;  %792 = vmatprep.subr.bf16.mxu1 %v2345_v26  ;;  %v319_v40 = vld [vmem:[%s2321_s23 + $0x20] sm:$0xff]  ;;  %v2427_v43 = vld [vmem:[%s3107_s2 + $0x8c] ss:$16 sps:$4 sm:$0xff]   ;;  %v321_v51 = vld [vmem:[%s2321_s23 + $0x30] sm:$0xff]  ;;  %v337_v2 = vsub.s32 0, %v336_v63  ;;  %v341_v4 = vsub.s32 1, %v336_v63 }
  0x2e   : > { %453 = vmatprep.mubr.bf16.mxu0 %v3112_v15  ;;  %526 = vmatprep.mubr.bf16.mxu1 %v3112_v15  ;;  %v1878_v44 = vpack.c.bf16 %v320_v41, %v319_v40  ;;  %v2434_v45 = vld [vmem:[%s3107_s2 + $0x80] ss:$16 sps:$4 sm:$0xff]   ;;  %v2441_v46 = vld [vmem:[%s3107_s2 + $0x88] ss:$16 sps:$4 sm:$0xff]   ;;  %v2448_v47 = vld [vmem:[%s3107_s2 + $0xa4] ss:$16 sps:$4 sm:$0xff]  }
  0x2f   : > { %v2453_v48 = vld [vmem:[%s3107_s2 + $0xac] ss:$16 sps:$4 sm:$0xff]   ;;  %v2460_v49 = vld [vmem:[%s3107_s2 + $0xa0] ss:$16 sps:$4 sm:$0xff]   ;;  %v2467_v50 = vld [vmem:[%s3107_s2 + $0xa8] ss:$16 sps:$4 sm:$0xff]  }
  0x30   : > { %752 = vmatpush1.bf16.msra.mxu0 %v2350_v27  ;;  %793 = vmatpush1.bf16.msra.mxu1 %v2357_v28  ;;  %v322_v52 = vld [vmem:[%s2321_s23 + $0x38] sm:$0xff]  ;;  %v2476_v53 = vld [vmem:[%s3107_s2 + $0xc4] ss:$16 sps:$4 sm:$0xff]   ;;  %s3161_s5 = smov (!%p310_p8, %s1790_s5), 1  ;;  %vm1729_vm3 = vcmask 7168  }
  0x31   : > { %753 = vmatprep.subr.bf16.mxu0 %v2368_v31  ;;  %794 = vmatprep.subr.bf16.mxu1 %v2373_v32  ;;  %v2481_v54 = vld [vmem:[%s3107_s2 + $0xcc] ss:$16 sps:$4 sm:$0xff]   ;;  %v1879_v55 = vpack.c.bf16 %v322_v52, %v321_v51  ;;  %v2490_v56 = vld [vmem:[%s3107_s2 + $0xc0] ss:$16 sps:$4 sm:$0xff]   ;;  %v2495_v57 = vld [vmem:[%s3107_s2 + $0xc8] ss:$16 sps:$4 sm:$0xff]  }
  0x32   : > { %v2502_v58 = vld [vmem:[%s3107_s2 + $0xe4] ss:$16 sps:$4 sm:$0xff]   ;;  %v2507_v59 = vld [vmem:[%s3107_s2 + $0xec] ss:$16 sps:$4 sm:$0xff]   ;;  %v2516_v60 = vld [vmem:[%s3107_s2 + $0xe0] ss:$16 sps:$4 sm:$0xff]  }
  0x33   : > { %1809 = vmatmul.mubr.msk.bf16.gmra.mrb[4].mxu0 %vm385_vm1, %v1877_v33  ;;  %1814 = vmatmul.mubr.msk.bf16.gmra.mrb[4].mxu1 %vm385_vm1, %v1877_v33  ;;  %v2521_v61 = vld [vmem:[%s3107_s2 + $0xe8] ss:$16 sps:$4 sm:$0xff]   ;;  %v333_v3 = vld [vmem:[%s3108_s3] sm:$0xf]  ;;  %s1798_s27 = sshll.u32 %s3161_s5, 3 }
  0x34   : > { %754 = vmatpush1.bf16.msra.mxu0 %v2382_v34  ;;  %795 = vmatpush1.bf16.msra.mxu1 %v2387_v35  ;;  %v2570_v5 = vrot.slane %v333_v3, %v345_v0  ;;  %v2576_v8 = vrot.slane %v333_v3, %v349_v1  ;;  %v338_v9 = vrot.slane %v333_v3, %v337_v2  ;;  %s313_s7 = scalar_lea.vmem %s3111_s6, %s1798_s27 }
  0x35   : > { %755 = vmatprep.subr.bf16.mxu0 %v2394_v36  ;;  %796 = vmatprep.subr.bf16.mxu1 %v2399_v37  ;;  %v342_v12 = vrot.slane %v333_v3, %v341_v4 }
  0x36   : > { %463 = vmatprep.mubr.bf16.mxu0 %v3112_v15  ;;  %536 = vmatprep.mubr.bf16.mxu1 %v3112_v15 }
  0x38   : > { %756 = vmatpush1.bf16.msra.mxu0 %v2404_v38  ;;  %797 = vmatpush1.bf16.msra.mxu1 %v2409_v39 }
  0x39   : > { %757 = vmatprep.subr.bf16.mxu0 %v2420_v42  ;;  %798 = vmatprep.subr.bf16.mxu1 %v2427_v43 }
  0x3b   : > { %1810 = vmatmul.mubr.msk.bf16.gmra.mrb[8].mxu0 %vm385_vm1, %v1878_v44  ;;  %1815 = vmatmul.mubr.msk.bf16.gmra.mrb[8].mxu1 %vm385_vm1, %v1878_v44 }
  0x3c   : > { %758 = vmatpush1.bf16.msra.mxu0 %v2434_v45  ;;  %799 = vmatpush1.bf16.msra.mxu1 %v2441_v46 }
  0x3d   : > { %759 = vmatprep.subr.bf16.mxu0 %v2448_v47  ;;  %800 = vmatprep.subr.bf16.mxu1 %v2453_v48 }
  0x3e   : > { %473 = vmatprep.mubr.bf16.mxu0 %v3112_v15  ;;  %546 = vmatprep.mubr.bf16.mxu1 %v3112_v15 }
  0x40   : > { %760 = vmatpush1.bf16.msra.mxu0 %v2460_v49  ;;  %801 = vmatpush1.bf16.msra.mxu1 %v2467_v50 }
  0x41   : > { %761 = vmatprep.subr.bf16.mxu0 %v2476_v53  ;;  %802 = vmatprep.subr.bf16.mxu1 %v2481_v54 }
  0x43   : > { %1811 = vmatmul.mubr.msk.bf16.gmra.mrb[12].mxu0 %vm385_vm1, %v1879_v55  ;;  %1816 = vmatmul.mubr.msk.bf16.gmra.mrb[12].mxu1 %vm385_vm1, %v1879_v55 }
  0x44   : > { %762 = vmatpush1.bf16.msra.mxu0 %v2490_v56  ;;  %803 = vmatpush1.bf16.msra.mxu1 %v2495_v57 }
  0x45   : > { %763 = vmatprep.subr.bf16.mxu0 %v2502_v58  ;;  %804 = vmatprep.subr.bf16.mxu1 %v2507_v59 }
  0x46   : > { %781 = vmatprep.mubr.bf16.mxu0 %v3112_v15  ;;  %822 = vmatprep.mubr.bf16.mxu1 %v3112_v15 }
  0x48   : > { %764 = vmatpush1.bf16.msra.mxu0 %v2516_v60  ;;  %805 = vmatpush1.bf16.msra.mxu1 %v2521_v61 }
  0x49   : > { %860 = vmatprep.subr.bf16.mxu0 %v2309_v16  ;;  %901 = vmatprep.subr.bf16.mxu1 %v2315_v17 }
  0x4b   : > { %782 = vmatmul.mubr.bf16.vlgmr.msra.gmra.mrb[16].mxu0 %v3112_v15  ;;  %823 = vmatmul.mubr.bf16.vlgmr.msra.gmra.mrb[16].mxu1 %v3112_v15 }
  0x4c   : > { %861 = vmatpush1.bf16.msra.mxu0 %v2328_v22  ;;  %902 = vmatpush1.bf16.msra.mxu1 %v2333_v24 }
  0x4d   : > { %862 = vmatprep.subr.bf16.mxu0 %v2340_v25  ;;  %903 = vmatprep.subr.bf16.mxu1 %v2345_v26 }
  0x4e   : > { %892 = vmatprep.mubr.bf16.mxu0 %v3112_v15  ;;  %933 = vmatprep.mubr.bf16.mxu1 %v3112_v15 }
  0x50   : > { %863 = vmatpush1.bf16.msra.mxu0 %v2350_v27  ;;  %904 = vmatpush1.bf16.msra.mxu1 %v2357_v28 }
  0x51   : > { %864 = vmatprep.subr.bf16.mxu0 %v2368_v31  ;;  %905 = vmatprep.subr.bf16.mxu1 %v2373_v32 }
  0x54   : > { %865 = vmatpush1.bf16.msra.mxu0 %v2382_v34  ;;  %906 = vmatpush1.bf16.msra.mxu1 %v2387_v35 }
  0x55   : > { %866 = vmatprep.subr.bf16.mxu0 %v2394_v36  ;;  %907 = vmatprep.subr.bf16.mxu1 %v2399_v37 }
  0x58   : > { %867 = vmatpush1.bf16.msra.mxu0 %v2404_v38  ;;  %908 = vmatpush1.bf16.msra.mxu1 %v2409_v39 }
  0x59   : > { %868 = vmatprep.subr.bf16.mxu0 %v2420_v42  ;;  %909 = vmatprep.subr.bf16.mxu1 %v2427_v43 }
  0x5c   : > { %869 = vmatpush1.bf16.msra.mxu0 %v2434_v45  ;;  %910 = vmatpush1.bf16.msra.mxu1 %v2441_v46 }
  0x5d   : > { %870 = vmatprep.subr.bf16.mxu0 %v2448_v47  ;;  %911 = vmatprep.subr.bf16.mxu1 %v2453_v48 }
  0x60   : > { %871 = vmatpush1.bf16.msra.mxu0 %v2460_v49  ;;  %912 = vmatpush1.bf16.msra.mxu1 %v2467_v50 }
  0x61   : > { %872 = vmatprep.subr.bf16.mxu0 %v2476_v53  ;;  %913 = vmatprep.subr.bf16.mxu1 %v2481_v54 }
  0x64   : > { %873 = vmatpush1.bf16.msra.mxu0 %v2490_v56  ;;  %914 = vmatpush1.bf16.msra.mxu1 %v2495_v57 }
  0x65   : > { %874 = vmatprep.subr.bf16.mxu0 %v2502_v58  ;;  %915 = vmatprep.subr.bf16.mxu1 %v2507_v59 }
  0x68   : > { %875 = vmatpush1.bf16.msra.mxu0 %v2516_v60  ;;  %916 = vmatpush1.bf16.msra.mxu1 %v2521_v61 }
  0x69   : > { %971 = vmatprep.subr.bf16.mxu0 %v2309_v16  ;;  %1012 = vmatprep.subr.bf16.mxu1 %v2315_v17 }
  0xfe   : > { %v2572_v6 = vpop.f32.mrb[0].mxu0  ;;  %v2574_v7 = vpop.f32.mrb[0].mxu1 }
  0xff   : > { %v447_v10 = vpop.f32.mrb[1].mxu0  ;;  %v520_v11 = vpop.f32.mrb[1].mxu1 }
 0x100   : > { %v449_v13 = vpop.f32.mrb[2].mxu0  ;;  %v522_v14 = vpop.f32.mrb[2].mxu1 }
 0x101   : > { %v2578_v18 = vadd.f32 %v449_v13, %v338_v9  ;;  %v451_v19 = vpop.f32.mrb[3].mxu0  ;;  %v2581_v20 = vadd.f32 %v522_v14, %v2570_v5  ;;  %v524_v21 = vpop.f32.mrb[3].mxu1 }
 0x102   : > { %v2583_v23 = vadd.f32 %v451_v19, %v342_v12  ;;  %v2586_v29 = vadd.f32 %v524_v21, %v2576_v8 }
 0x106   : > { %v455_v30 = vpop.f32.mrb[4].mxu0  ;;  %v528_v33 = vpop.f32.mrb[4].mxu1 }
 0x107   : > { %v2588_v40 = vadd.f32 %v455_v30, %v338_v9  ;;  %v457_v41 = vpop.f32.mrb[5].mxu0  ;;  %v2591_v44 = vadd.f32 %v528_v33, %v2570_v5  ;;  %v530_v51 = vpop.f32.mrb[5].mxu1 }
 0x108   : > { %v2593_v52 = vadd.f32 %v457_v41, %v342_v12  ;;  %v459_v55 = vpop.f32.mrb[6].mxu0  ;;  %v2596_v62 = vadd.f32 %v530_v51, %v2576_v8  ;;  %v532_v63 = vpop.f32.mrb[6].mxu1 }
 0x109   : > { %v2598_v0 = vadd.f32 %v459_v55, %v338_v9  ;;  %v461_v1 = vpop.f32.mrb[7].mxu0  ;;  %v2601_v2 = vadd.f32 %v532_v63, %v2570_v5  ;;  %v534_v3 = vpop.f32.mrb[7].mxu1 }
 0x10a   : > { %3114 = vst [vmem:[#allocation4_spill] sm:$0xff] %v2596_v62  ;;  %v2603_v4 = vadd.f32 %v461_v1, %v342_v12  ;;  %v2606_v13 = vadd.f32 %v534_v3, %v2576_v8 }
 0x10b   : > { %3115 = vst [vmem:[#allocation5_spill] sm:$0xff] %v2598_v0  ;;  %3116 = vst [vmem:[#allocation6_spill] sm:$0xff] %v2601_v2 }
 0x10c   : > { %3117 = vst [vmem:[#allocation7_spill] sm:$0xff] %v2603_v4  ;;  %3118 = vst [vmem:[#allocation8_spill] sm:$0xff] %v2606_v13 }
 0x10e   : > { %v465_v14 = vpop.f32.mrb[8].mxu0  ;;  %v538_v19 = vpop.f32.mrb[8].mxu1 }
 0x10f   : > { %v2608_v21 = vadd.f32 %v465_v14, %v338_v9  ;;  %v467_v30 = vpop.f32.mrb[9].mxu0  ;;  %v2611_v33 = vadd.f32 %v538_v19, %v2570_v5  ;;  %v540_v41 = vpop.f32.mrb[9].mxu1 }
 0x110   : > { %v2613_v51 = vadd.f32 %v467_v30, %v342_v12  ;;  %v469_v55 = vpop.f32.mrb[10].mxu0  ;;  %v2616_v63 = vadd.f32 %v540_v41, %v2576_v8  ;;  %v542_v1 = vpop.f32.mrb[10].mxu1 }
 0x111   : > { %3119 = vst [vmem:[#allocation9_spill] sm:$0xff] %v2608_v21  ;;  %3120 = vst [vmem:[#allocation10_spill] sm:$0xff] %v2611_v33  ;;  %v2618_v15 = vadd.f32 %v469_v55, %v338_v9  ;;  %v471_v3 = vpop.f32.mrb[11].mxu0  ;;  %v2621_v13 = vadd.f32 %v542_v1, %v2570_v5  ;;  %v544_v14 = vpop.f32.mrb[11].mxu1 }
 0x112   : > { %3121 = vst [vmem:[#allocation11_spill] sm:$0xff] %v2613_v51  ;;  %3122 = vst [vmem:[#allocation12_spill] sm:$0xff] %v2616_v63  ;;  %v2623_v21 = vadd.f32 %v471_v3, %v342_v12  ;;  %v2626_v19 = vadd.f32 %v544_v14, %v2576_v8 }
 0x113   : > { %3123 = vst [vmem:[#allocation13_spill] sm:$0xff] %v2618_v15  ;;  %3124 = vst [vmem:[#allocation14_spill] sm:$0xff] %v2621_v13 }
 0x114   : > { %3125 = vst [vmem:[#allocation15_spill] sm:$0xff] %v2623_v21  ;;  %3126 = vst [vmem:[#allocation16_spill] sm:$0xff] %v2626_v19 }
 0x116   : > { %v475_v33 = vpop.f32.mrb[12].mxu0  ;;  %v548_v30 = vpop.f32.mrb[12].mxu1 }
 0x117   : > { %v2628_v51 = vadd.f32 %v475_v33, %v338_v9  ;;  %v477_v4 = vpop.f32.mrb[13].mxu0  ;;  %v2631_v41 = vadd.f32 %v548_v30, %v2570_v5  ;;  %v550_v55 = vpop.f32.mrb[13].mxu1 }
 0x118   : > { %v2633_v15 = vadd.f32 %v477_v4, %v342_v12  ;;  %v479_v63 = vpop.f32.mrb[14].mxu0  ;;  %v2636_v1 = vadd.f32 %v550_v55, %v2576_v8  ;;  %v552_v3 = vpop.f32.mrb[14].mxu1  ;;  %v446_v4 = vadd.f32 %v2572_v6, %v338_v9  ;;  %v448_v55 = vadd.f32 %v447_v10, %v342_v12 }
 0x119   : > { %3127 = vst [vmem:[#allocation17_spill] sm:$0xff] %v2628_v51  ;;  %3128 = vst [vmem:[#allocation18_spill] sm:$0xff] %v2631_v41  ;;  %v2638_v21 = vadd.f32 %v479_v63, %v338_v9  ;;  %v481_v14 = vpop.f32.mrb[15].mxu0  ;;  %v2641_v19 = vadd.f32 %v552_v3, %v2570_v5  ;;  %v554_v33 = vpop.f32.mrb[15].mxu1 }
 0x11a   : > { %3129 = vst [vmem:[#allocation19_spill] sm:$0xff] %v2633_v15  ;;  %3130 = vst [vmem:[#allocation20_spill] sm:$0xff] %v2636_v1  ;;  %v2643_v51 = vadd.f32 %v481_v14, %v342_v12  ;;  %v2646_v30 = vadd.f32 %v554_v33, %v2576_v8  ;;  %v519_v15 = vadd.f32 %v2574_v7, %v2570_v5 }
 0x11b   : > { %3131 = vst [vmem:[#allocation21_spill] sm:$0xff] %v2638_v21  ;;  %3132 = vst [vmem:[#allocation22_spill] sm:$0xff] %v2641_v19  ;;  %v521_v1 = vadd.f32 %v520_v11, %v2576_v8 }
 0x11c   : > { %3133 = vst [vmem:[#allocation23_spill] sm:$0xff] %v2643_v51  ;;  %3134 = vst [vmem:[#allocation24_spill] sm:$0xff] %v2646_v30 }
 0x11e   : > { %v783_v63 = vpop.f32.mrb[16].mxu0  ;;  %v824_v21 = vpop.f32.mrb[16].mxu1 }
 0x11f   : > { %v831_v41 = vadd.f32 %v783_v63, %v446_v4  ;;  %v833_v13 = vadd.f32 %v824_v21, %v519_v15  ;;  %v785_v3 = vpop.f32.mrb[17].mxu0  ;;  %v826_v19 = vpop.f32.mrb[17].mxu1 }
 0x120   : > { %v832_v2 = vadd.f32 %v785_v3, %v448_v55  ;;  %v834_v14 = vadd.f32 %v826_v19, %v521_v1  ;;  %v787_v51 = vpop.f32.mrb[18].mxu0  ;;  %v828_v0 = vpop.f32.mrb[18].mxu1 }
 0x121   : > { %v1849_v33 = vmul.f32 -1.442695, %v831_v41  ;;  %v788_v30 = vpop.f32.mrb[19].mxu0  ;;  %v829_v62 = vpop.f32.mrb[19].mxu1  ;;  %v1851_v5 = vmul.f32 -1.442695, %v833_v13 }
 0x122   : > { %v1850_v6 = vmul.f32 -1.442695, %v832_v2  ;;  %v3135_v30 = vmov 0  }
 0x123   : > { %2036 = vpow2.f32 %v1849_v33 }
 0x124   : > { %2038 = vpow2.f32 %v1850_v6 }
 0x125   : > { %2040 = vtanh.f32 %v834_v14 }
 0x126   : > { %2042 = vpow2.f32 %v1851_v5 }
 0x12d   : > { %v2037_v7 = vpop.eup %2036 }
 0x12e   : > { %v844_v9 = vadd.f32 1.0, %v2037_v7  ;;  %v2039_v8 = vpop.eup %2038 }
 0x12f   : > { %v845_v15 = vadd.f32 1.0, %v2039_v8  ;;  %v2041_v10 = vpop.eup %2040 }
 0x130   : > { %2044 = vrcp.f32 %v844_v9  ;;  %v2043_v11 = vpop.eup %2042 }
 0x131   : > { %2046 = vrcp.f32 %v845_v15  ;;  %v846_v51 = vadd.f32 1.0, %v2043_v11 }
 0x133   : > { %2048 = vrcp.f32 %v846_v51 }
 0x13a   : > { %v2045_v12 = vpop.eup %2044 }
 0x13b   : > { %v855_v21 = vmul.f32 %v2045_v12, %v2041_v10  ;;  %v2047_v0 = vpop.eup %2046 }
 0x13c   : > { %v854_v19 = vmul.f32 0.0, %v2047_v0 }
 0x13d   : > { %v2049_v2 = vpop.eup %2048 }
 0x13e   : > { %v2652_v62 = vadd.f32 %v855_v21, %v854_v19 }
 0x140   : > { %2050 = vtanh.f32 %v2652_v62 }
 0x14a   : > { %v2051_v13 = vpop.eup %2050 }
 0x14b   : > { %v858_v41 = vmul.f32 %v2051_v13, %v2049_v2 }
 0x14d   : > { %v859_v1 = vpack.c.bf16 %v858_v41, %v858_v41 }
 0x14f   : > { %893 = vmatmul.mubr.bf16.vlgmr.msra.gmra.mrb[20].mxu0 %v859_v1  ;;  %934 = vmatmul.mubr.bf16.vlgmr.msra.gmra.mrb[20].mxu1 %v859_v1 }
 0x150   : > { %972 = vmatpush1.bf16.msra.mxu0 %v2328_v22  ;;  %1013 = vmatpush1.bf16.msra.mxu1 %v2333_v24 }
 0x151   : > { %973 = vmatprep.subr.bf16.mxu0 %v2340_v25  ;;  %1014 = vmatprep.subr.bf16.mxu1 %v2345_v26 }
 0x152   : > { %1003 = vmatprep.mubr.bf16.mxu0 %v3135_v30  ;;  %1044 = vmatprep.mubr.bf16.mxu1 %v3135_v30 }
 0x154   : > { %974 = vmatpush1.bf16.msra.mxu0 %v2350_v27  ;;  %1015 = vmatpush1.bf16.msra.mxu1 %v2357_v28 }
 0x155   : > { %975 = vmatprep.subr.bf16.mxu0 %v2368_v31  ;;  %1016 = vmatprep.subr.bf16.mxu1 %v2373_v32 }
 0x158   : > { %976 = vmatpush1.bf16.msra.mxu0 %v2382_v34  ;;  %1017 = vmatpush1.bf16.msra.mxu1 %v2387_v35 }
 0x159   : > { %977 = vmatprep.subr.bf16.mxu0 %v2394_v36  ;;  %1018 = vmatprep.subr.bf16.mxu1 %v2399_v37 }
 0x15c   : > { %978 = vmatpush1.bf16.msra.mxu0 %v2404_v38  ;;  %1019 = vmatpush1.bf16.msra.mxu1 %v2409_v39 }
 0x15d   : > { %979 = vmatprep.subr.bf16.mxu0 %v2420_v42  ;;  %1020 = vmatprep.subr.bf16.mxu1 %v2427_v43 }
 0x160   : > { %980 = vmatpush1.bf16.msra.mxu0 %v2434_v45  ;;  %1021 = vmatpush1.bf16.msra.mxu1 %v2441_v46 }
 0x161   : > { %981 = vmatprep.subr.bf16.mxu0 %v2448_v47  ;;  %1022 = vmatprep.subr.bf16.mxu1 %v2453_v48 }
 0x164   : > { %982 = vmatpush1.bf16.msra.mxu0 %v2460_v49  ;;  %1023 = vmatpush1.bf16.msra.mxu1 %v2467_v50 }
 0x165   : > { %983 = vmatprep.subr.bf16.mxu0 %v2476_v53  ;;  %1024 = vmatprep.subr.bf16.mxu1 %v2481_v54 }
 0x168   : > { %984 = vmatpush1.bf16.msra.mxu0 %v2490_v56  ;;  %1025 = vmatpush1.bf16.msra.mxu1 %v2495_v57 }
 0x169   : > { %985 = vmatprep.subr.bf16.mxu0 %v2502_v58  ;;  %1026 = vmatprep.subr.bf16.mxu1 %v2507_v59 }
 0x16c   : > { %986 = vmatpush1.bf16.msra.mxu0 %v2516_v60  ;;  %1027 = vmatpush1.bf16.msra.mxu1 %v2521_v61 }
 0x16d   : > { %1082 = vmatprep.subr.bf16.mxu0 %v2309_v16  ;;  %1123 = vmatprep.subr.bf16.mxu1 %v2315_v17 }
 0x222   : > { %v894_v4 = vpop.f32.mrb[20].mxu0  ;;  %v935_v55 = vpop.f32.mrb[20].mxu1 }
 0x223   : > { %v942_v63 = vadd.f32 %v894_v4, %v2578_v18  ;;  %v944_v3 = vadd.f32 %v935_v55, %v2581_v20  ;;  %v896_v14 = vpop.f32.mrb[21].mxu0  ;;  %v937_v33 = vpop.f32.mrb[21].mxu1 }
 0x224   : > { %v943_v6 = vadd.f32 %v896_v14, %v2583_v23  ;;  %v945_v5 = vadd.f32 %v937_v33, %v2586_v29  ;;  %v898_v7 = vpop.f32.mrb[22].mxu0  ;;  %v939_v9 = vpop.f32.mrb[22].mxu1 }
 0x225   : > { %v1852_v8 = vmul.f32 -1.442695, %v942_v63  ;;  %v899_v15 = vpop.f32.mrb[23].mxu0  ;;  %v940_v10 = vpop.f32.mrb[23].mxu1  ;;  %v1854_v12 = vmul.f32 -1.442695, %v944_v3 }
 0x226   : > { %v1853_v11 = vmul.f32 -1.442695, %v943_v6 }
 0x227   : > { %2052 = vpow2.f32 %v1852_v8  ;;  %v3136_v8 = vld [vmem:[#allocation4_spill] sm:$0xff] }
 0x228   : > { %2054 = vpow2.f32 %v1853_v11 }
 0x229   : > { %2056 = vtanh.f32 %v945_v5 }
 0x22a   : > { %2058 = vpow2.f32 %v1854_v12 }
 0x231   : > { %v2053_v21 = vpop.eup %2052 }
 0x232   : > { %v955_v0 = vadd.f32 1.0, %v2053_v21  ;;  %v2055_v18 = vpop.eup %2054 }
 0x233   : > { %v956_v20 = vadd.f32 1.0, %v2055_v18  ;;  %v2057_v23 = vpop.eup %2056 }
 0x234   : > { %2060 = vrcp.f32 %v955_v0  ;;  %v2059_v51 = vpop.eup %2058 }
 0x235   : > { %2062 = vrcp.f32 %v956_v20  ;;  %v957_v13 = vadd.f32 1.0, %v2059_v51 }
 0x237   : > { %2064 = vrcp.f32 %v957_v13 }
 0x23e   : > { %v2061_v29 = vpop.eup %2060 }
 0x23f   : > { %v966_v19 = vmul.f32 %v2061_v29, %v2057_v23  ;;  %v2063_v2 = vpop.eup %2062 }
 0x240   : > { %v965_v41 = vmul.f32 %v2063_v2, %v2652_v62 }
 0x241   : > { %v2065_v4 = vpop.eup %2064 }
 0x242   : > { %v2694_v1 = vadd.f32 %v966_v19, %v965_v41 }
 0x244   : > { %2066 = vtanh.f32 %v2694_v1 }
 0x24e   : > { %v2067_v55 = vpop.eup %2066 }
 0x24f   : > { %v969_v63 = vmul.f32 %v2067_v55, %v2065_v4 }
 0x251   : > { %v970_v3 = vpack.c.bf16 %v969_v63, %v969_v63 }
 0x253   : > { %1004 = vmatmul.mubr.bf16.vlgmr.msra.gmra.mrb[24].mxu0 %v970_v3  ;;  %1045 = vmatmul.mubr.bf16.vlgmr.msra.gmra.mrb[24].mxu1 %v970_v3 }
 0x254   : > { %1083 = vmatpush1.bf16.msra.mxu0 %v2328_v22  ;;  %1124 = vmatpush1.bf16.msra.mxu1 %v2333_v24 }
 0x255   : > { %1084 = vmatprep.subr.bf16.mxu0 %v2340_v25  ;;  %1125 = vmatprep.subr.bf16.mxu1 %v2345_v26 }
 0x256   : > { %1114 = vmatprep.mubr.bf16.mxu0 %v3135_v30  ;;  %1155 = vmatprep.mubr.bf16.mxu1 %v3135_v30 }
 0x258   : > { %1085 = vmatpush1.bf16.msra.mxu0 %v2350_v27  ;;  %1126 = vmatpush1.bf16.msra.mxu1 %v2357_v28 }
 0x259   : > { %1086 = vmatprep.subr.bf16.mxu0 %v2368_v31  ;;  %1127 = vmatprep.subr.bf16.mxu1 %v2373_v32 }
 0x25c   : > { %1087 = vmatpush1.bf16.msra.mxu0 %v2382_v34  ;;  %1128 = vmatpush1.bf16.msra.mxu1 %v2387_v35 }
 0x25d   : > { %1088 = vmatprep.subr.bf16.mxu0 %v2394_v36  ;;  %1129 = vmatprep.subr.bf16.mxu1 %v2399_v37 }
 0x260   : > { %1089 = vmatpush1.bf16.msra.mxu0 %v2404_v38  ;;  %1130 = vmatpush1.bf16.msra.mxu1 %v2409_v39 }
 0x261   : > { %1090 = vmatprep.subr.bf16.mxu0 %v2420_v42  ;;  %1131 = vmatprep.subr.bf16.mxu1 %v2427_v43 }
 0x264   : > { %1091 = vmatpush1.bf16.msra.mxu0 %v2434_v45  ;;  %1132 = vmatpush1.bf16.msra.mxu1 %v2441_v46 }
 0x265   : > { %1092 = vmatprep.subr.bf16.mxu0 %v2448_v47  ;;  %1133 = vmatprep.subr.bf16.mxu1 %v2453_v48 }
 0x268   : > { %1093 = vmatpush1.bf16.msra.mxu0 %v2460_v49  ;;  %1134 = vmatpush1.bf16.msra.mxu1 %v2467_v50 }
 0x269   : > { %1094 = vmatprep.subr.bf16.mxu0 %v2476_v53  ;;  %1135 = vmatprep.subr.bf16.mxu1 %v2481_v54 }
 0x26c   : > { %1095 = vmatpush1.bf16.msra.mxu0 %v2490_v56  ;;  %1136 = vmatpush1.bf16.msra.mxu1 %v2495_v57 }
 0x26d   : > { %1096 = vmatprep.subr.bf16.mxu0 %v2502_v58  ;;  %1137 = vmatprep.subr.bf16.mxu1 %v2507_v59 }
 0x270   : > { %1097 = vmatpush1.bf16.msra.mxu0 %v2516_v60  ;;  %1138 = vmatpush1.bf16.msra.mxu1 %v2521_v61 }
 0x271   : > { %1193 = vmatprep.subr.bf16.mxu0 %v2309_v16  ;;  %1234 = vmatprep.subr.bf16.mxu1 %v2315_v17 }
 0x326   : > { %v1005_v62 = vpop.f32.mrb[24].mxu0  ;;  %v1046_v14 = vpop.f32.mrb[24].mxu1 }
 0x327   : > { %v1053_v33 = vadd.f32 %v1005_v62, %v2588_v40  ;;  %v1055_v6 = vadd.f32 %v1046_v14, %v2591_v44  ;;  %v1007_v5 = vpop.f32.mrb[25].mxu0  ;;  %v1048_v7 = vpop.f32.mrb[25].mxu1 }
 0x328   : > { %v1054_v9 = vadd.f32 %v1007_v5, %v2593_v52  ;;  %v1056_v15 = vadd.f32 %v1048_v7, %v3136_v8  ;;  %v1009_v10 = vpop.f32.mrb[26].mxu0  ;;  %v1050_v11 = vpop.f32.mrb[26].mxu1  ;;  %v3138_v7 = vld [vmem:[#allocation6_spill] sm:$0xff] }
 0x329   : > { %v1855_v12 = vmul.f32 -1.442695, %v1053_v33  ;;  %v1010_v21 = vpop.f32.mrb[27].mxu0  ;;  %v1051_v0 = vpop.f32.mrb[27].mxu1  ;;  %v1857_v20 = vmul.f32 -1.442695, %v1055_v6 }
 0x32a   : > { %v1856_v18 = vmul.f32 -1.442695, %v1054_v9  ;;  %v3137_v6 = vld [vmem:[#allocation5_spill] sm:$0xff]  ;;  %v3139_v10 = vld [vmem:[#allocation7_spill] sm:$0xff] }
 0x32b   : > { %2068 = vpow2.f32 %v1855_v12  ;;  %v3140_v12 = vld [vmem:[#allocation8_spill] sm:$0xff] }
 0x32c   : > { %2070 = vpow2.f32 %v1856_v18 }
 0x32d   : > { %2072 = vtanh.f32 %v1056_v15 }
 0x32e   : > { %2074 = vpow2.f32 %v1857_v20 }
 0x335   : > { %v2069_v23 = vpop.eup %2068 }
 0x336   : > { %v1066_v51 = vadd.f32 1.0, %v2069_v23  ;;  %v2071_v40 = vpop.eup %2070 }
 0x337   : > { %v1067_v44 = vadd.f32 1.0, %v2071_v40  ;;  %v2073_v52 = vpop.eup %2072 }
 0x338   : > { %2076 = vrcp.f32 %v1066_v51  ;;  %v2075_v29 = vpop.eup %2074 }
 0x339   : > { %2078 = vrcp.f32 %v1067_v44  ;;  %v1068_v41 = vadd.f32 1.0, %v2075_v29 }
 0x33b   : > { %2080 = vrcp.f32 %v1068_v41 }
 0x342   : > { %v2077_v19 = vpop.eup %2076 }
 0x343   : > { %v1077_v2 = vmul.f32 %v2077_v19, %v2073_v52  ;;  %v2079_v13 = vpop.eup %2078 }
 0x344   : > { %v1076_v4 = vmul.f32 %v2079_v13, %v2694_v1 }
 0x345   : > { %v2081_v63 = vpop.eup %2080 }
 0x346   : > { %v2736_v55 = vadd.f32 %v1077_v2, %v1076_v4 }
 0x348   : > { %2082 = vtanh.f32 %v2736_v55 }
 0x352   : > { %v2083_v3 = vpop.eup %2082 }
 0x353   : > { %v1080_v62 = vmul.f32 %v2083_v3, %v2081_v63 }
 0x355   : > { %v1081_v14 = vpack.c.bf16 %v1080_v62, %v1080_v62 }
 0x357   : > { %1115 = vmatmul.mubr.bf16.vlgmr.msra.gmra.mrb[28].mxu0 %v1081_v14  ;;  %1156 = vmatmul.mubr.bf16.vlgmr.msra.gmra.mrb[28].mxu1 %v1081_v14 }
 0x358   : > { %1194 = vmatpush1.bf16.msra.mxu0 %v2328_v22  ;;  %1235 = vmatpush1.bf16.msra.mxu1 %v2333_v24 }
 0x359   : > { %1195 = vmatprep.subr.bf16.mxu0 %v2340_v25  ;;  %1236 = vmatprep.subr.bf16.mxu1 %v2345_v26 }
 0x35a   : > { %1225 = vmatprep.mubr.bf16.mxu0 %v3135_v30  ;;  %1266 = vmatprep.mubr.bf16.mxu1 %v3135_v30 }
 0x35c   : > { %1196 = vmatpush1.bf16.msra.mxu0 %v2350_v27  ;;  %1237 = vmatpush1.bf16.msra.mxu1 %v2357_v28 }
 0x35d   : > { %1197 = vmatprep.subr.bf16.mxu0 %v2368_v31  ;;  %1238 = vmatprep.subr.bf16.mxu1 %v2373_v32 }
 0x360   : > { %1198 = vmatpush1.bf16.msra.mxu0 %v2382_v34  ;;  %1239 = vmatpush1.bf16.msra.mxu1 %v2387_v35 }
 0x361   : > { %1199 = vmatprep.subr.bf16.mxu0 %v2394_v36  ;;  %1240 = vmatprep.subr.bf16.mxu1 %v2399_v37 }
 0x364   : > { %1200 = vmatpush1.bf16.msra.mxu0 %v2404_v38  ;;  %1241 = vmatpush1.bf16.msra.mxu1 %v2409_v39 }
 0x365   : > { %1201 = vmatprep.subr.bf16.mxu0 %v2420_v42  ;;  %1242 = vmatprep.subr.bf16.mxu1 %v2427_v43 }
 0x368   : > { %1202 = vmatpush1.bf16.msra.mxu0 %v2434_v45  ;;  %1243 = vmatpush1.bf16.msra.mxu1 %v2441_v46 }
 0x369   : > { %1203 = vmatprep.subr.bf16.mxu0 %v2448_v47  ;;  %1244 = vmatprep.subr.bf16.mxu1 %v2453_v48 }
 0x36c   : > { %1204 = vmatpush1.bf16.msra.mxu0 %v2460_v49  ;;  %1245 = vmatpush1.bf16.msra.mxu1 %v2467_v50 }
 0x36d   : > { %1205 = vmatprep.subr.bf16.mxu0 %v2476_v53  ;;  %1246 = vmatprep.subr.bf16.mxu1 %v2481_v54 }
 0x370   : > { %1206 = vmatpush1.bf16.msra.mxu0 %v2490_v56  ;;  %1247 = vmatpush1.bf16.msra.mxu1 %v2495_v57 }
 0x371   : > { %1207 = vmatprep.subr.bf16.mxu0 %v2502_v58  ;;  %1248 = vmatprep.subr.bf16.mxu1 %v2507_v59 }
 0x374   : > { %1208 = vmatpush1.bf16.msra.mxu0 %v2516_v60  ;;  %1249 = vmatpush1.bf16.msra.mxu1 %v2521_v61 }
 0x375   : > { %1304 = vmatprep.subr.bf16.mxu0 %v2309_v16  ;;  %1345 = vmatprep.subr.bf16.mxu1 %v2315_v17 }
 0x42a   : > { %v1116_v1 = vpop.f32.mrb[28].mxu0  ;;  %v1157_v33 = vpop.f32.mrb[28].mxu1 }
 0x42b   : > { %v1164_v5 = vadd.f32 %v1116_v1, %v3137_v6  ;;  %v1166_v9 = vadd.f32 %v1157_v33, %v3138_v7  ;;  %v1118_v8 = vpop.f32.mrb[29].mxu0  ;;  %v1159_v15 = vpop.f32.mrb[29].mxu1 }
 0x42c   : > { %v1165_v11 = vadd.f32 %v1118_v8, %v3139_v10  ;;  %v1167_v21 = vadd.f32 %v1159_v15, %v3140_v12  ;;  %v1120_v0 = vpop.f32.mrb[30].mxu0  ;;  %v1161_v18 = vpop.f32.mrb[30].mxu1 }
 0x42d   : > { %v1858_v20 = vmul.f32 -1.442695, %v1164_v5  ;;  %v1121_v23 = vpop.f32.mrb[31].mxu0  ;;  %v1162_v51 = vpop.f32.mrb[31].mxu1  ;;  %v1860_v17 = vmul.f32 -1.442695, %v1166_v9 }
 0x42e   : > { %v1859_v16 = vmul.f32 -1.442695, %v1165_v11 }
 0x42f   : > { %2084 = vpow2.f32 %v1858_v20 }
 0x430   : > { %2086 = vpow2.f32 %v1859_v16 }
 0x431   : > { %2088 = vtanh.f32 %v1167_v21 }
 0x432   : > { %2090 = vpow2.f32 %v1860_v17 }
 0x439   : > { %v2085_v40 = vpop.eup %2084 }
 0x43a   : > { %v1177_v44 = vadd.f32 1.0, %v2085_v40  ;;  %v2087_v52 = vpop.eup %2086  ;;  %v2836_v40 = vld [vmem:[%s3107_s2] ss:$16 sps:$4 sm:$0xff]  }
 0x43b   : > { %v1178_v29 = vadd.f32 1.0, %v2087_v52  ;;  %v2089_v19 = vpop.eup %2088  ;;  %v2848_v52 = vld [vmem:[%s3107_s2 + $0x24] ss:$16 sps:$4 sm:$0xff]  }
 0x43c   : > { %2092 = vrcp.f32 %v1177_v44  ;;  %v2091_v2 = vpop.eup %2090  ;;  %v2842_v44 = vld [vmem:[%s3107_s2 + $0x8] ss:$16 sps:$4 sm:$0xff]  }
 0x43d   : > { %2094 = vrcp.f32 %v1178_v29  ;;  %v1179_v63 = vadd.f32 1.0, %v2091_v2  ;;  %v2854_v29 = vld [vmem:[%s3107_s2 + $0x2c] ss:$16 sps:$4 sm:$0xff]   ;;  %v2868_v2 = vld [vmem:[%s3107_s2 + $0x28] ss:$16 sps:$4 sm:$0xff]  }
 0x43f   : > { %2096 = vrcp.f32 %v1179_v63  ;;  %v2892_v63 = vld [vmem:[%s3107_s2 + $0x48] ss:$16 sps:$4 sm:$0xff]  }
 0x446   : > { %v2093_v13 = vpop.eup %2092 }
 0x447   : > { %v1188_v41 = vmul.f32 %v2093_v13, %v2089_v19  ;;  %v2095_v4 = vpop.eup %2094  ;;  %v2862_v19 = vld [vmem:[%s3107_s2 + $0x20] ss:$16 sps:$4 sm:$0xff]   ;;  %v2874_v13 = vld [vmem:[%s3107_s2 + $0x44] ss:$16 sps:$4 sm:$0xff]  }
 0x448   : > { %v1187_v3 = vmul.f32 %v2095_v4, %v2736_v55  ;;  %v2886_v4 = vld [vmem:[%s3107_s2 + $0x40] ss:$16 sps:$4 sm:$0xff]  }
 0x449   : > { %v2097_v14 = vpop.eup %2096 }
 0x44a   : > { %v2778_v62 = vadd.f32 %v1188_v41, %v1187_v3  ;;  %v2880_v41 = vld [vmem:[%s3107_s2 + $0x4c] ss:$16 sps:$4 sm:$0xff]   ;;  %v2898_v3 = vld [vmem:[%s3107_s2 + $0x64] ss:$16 sps:$4 sm:$0xff]  }
 0x44c   : > { %2098 = vtanh.f32 %v2778_v62 }
 0x456   : > { %v2099_v1 = vpop.eup %2098 }
 0x457   : > { %v1191_v33 = vmul.f32 %v2099_v1, %v2097_v14  ;;  %v2910_v14 = vld [vmem:[%s3107_s2 + $0x60] ss:$16 sps:$4 sm:$0xff]   ;;  %v2916_v1 = vld [vmem:[%s3107_s2 + $0x68] ss:$16 sps:$4 sm:$0xff]  }
 0x459   : > { %v1192_v6 = vpack.c.bf16 %v1191_v33, %v1191_v33  ;;  %v2922_v33 = vld [vmem:[%s3107_s2 + $0x84] ss:$16 sps:$4 sm:$0xff]  }
 0x45b   : > { %1226 = vmatmul.mubr.bf16.vlgmr.msra.gmra.mrb[32].mxu0 %v1192_v6  ;;  %1267 = vmatmul.mubr.bf16.vlgmr.msra.gmra.mrb[32].mxu1 %v1192_v6  ;;  %v2928_v6 = vld [vmem:[%s3107_s2 + $0x8c] ss:$16 sps:$4 sm:$0xff]  }
 0x45c   : > { %1305 = vmatpush1.bf16.msra.mxu0 %v2328_v22  ;;  %1346 = vmatpush1.bf16.msra.mxu1 %v2333_v24  ;;  %v2816_v22 = vld [vmem:[%s3107_s2 + $0x4] ss:$16 sps:$4 sm:$0xff]   ;;  %v2822_v24 = vld [vmem:[%s3107_s2 + $0xc] ss:$16 sps:$4 sm:$0xff]  }
 0x45d   : > { %1306 = vmatprep.subr.bf16.mxu0 %v2340_v25  ;;  %1347 = vmatprep.subr.bf16.mxu1 %v2345_v26 }
 0x45e   : > { %1336 = vmatprep.mubr.bf16.mxu0 %v3135_v30  ;;  %1377 = vmatprep.mubr.bf16.mxu1 %v3135_v30 }
 0x460   : > { %1307 = vmatpush1.bf16.msra.mxu0 %v2350_v27  ;;  %1348 = vmatpush1.bf16.msra.mxu1 %v2357_v28  ;;  %v3141_v27 = vld [vmem:[#allocation9_spill] sm:$0xff] }
 0x461   : > { %1308 = vmatprep.subr.bf16.mxu0 %v2368_v31  ;;  %1349 = vmatprep.subr.bf16.mxu1 %v2373_v32  ;;  %v3142_v31 = vld [vmem:[#allocation10_spill] sm:$0xff] }
 0x464   : > { %1309 = vmatpush1.bf16.msra.mxu0 %v2382_v34  ;;  %1350 = vmatpush1.bf16.msra.mxu1 %v2387_v35 }
 0x465   : > { %1310 = vmatprep.subr.bf16.mxu0 %v2394_v36  ;;  %1351 = vmatprep.subr.bf16.mxu1 %v2399_v37  ;;  %v3143_v36 = vld [vmem:[#allocation11_spill] sm:$0xff] }
 0x468   : > { %1311 = vmatpush1.bf16.msra.mxu0 %v2404_v38  ;;  %1352 = vmatpush1.bf16.msra.mxu1 %v2409_v39  ;;  %v3144_v38 = vld [vmem:[#allocation12_spill] sm:$0xff] }
 0x469   : > { %1312 = vmatprep.subr.bf16.mxu0 %v2420_v42  ;;  %1353 = vmatprep.subr.bf16.mxu1 %v2427_v43 }
 0x46c   : > { %1313 = vmatpush1.bf16.msra.mxu0 %v2434_v45  ;;  %1354 = vmatpush1.bf16.msra.mxu1 %v2441_v46 }
 0x46d   : > { %1314 = vmatprep.subr.bf16.mxu0 %v2448_v47  ;;  %1355 = vmatprep.subr.bf16.mxu1 %v2453_v48 }
 0x470   : > { %1315 = vmatpush1.bf16.msra.mxu0 %v2460_v49  ;;  %1356 = vmatpush1.bf16.msra.mxu1 %v2467_v50 }
 0x471   : > { %1316 = vmatprep.subr.bf16.mxu0 %v2476_v53  ;;  %1357 = vmatprep.subr.bf16.mxu1 %v2481_v54 }
 0x474   : > { %1317 = vmatpush1.bf16.msra.mxu0 %v2490_v56  ;;  %1358 = vmatpush1.bf16.msra.mxu1 %v2495_v57 }
 0x475   : > { %1318 = vmatprep.subr.bf16.mxu0 %v2502_v58  ;;  %1359 = vmatprep.subr.bf16.mxu1 %v2507_v59 }
 0x478   : > { %1319 = vmatpush1.bf16.msra.mxu0 %v2516_v60  ;;  %1360 = vmatpush1.bf16.msra.mxu1 %v2521_v61 }
 0x479   : > { %1415 = vmatprep.subr.bf16.mxu0 %v2816_v22  ;;  %1456 = vmatprep.subr.bf16.mxu1 %v2822_v24 }
 0x52e   : > { %v1227_v25 = vpop.f32.mrb[32].mxu0  ;;  %v1268_v26 = vpop.f32.mrb[32].mxu1 }
 0x52f   : > { %v1275_v28 = vadd.f32 %v1227_v25, %v3141_v27  ;;  %v1277_v32 = vadd.f32 %v1268_v26, %v3142_v31  ;;  %v1229_v34 = vpop.f32.mrb[33].mxu0  ;;  %v1270_v35 = vpop.f32.mrb[33].mxu1  ;;  %v2934_v25 = vld [vmem:[%s3107_s2 + $0x80] ss:$16 sps:$4 sm:$0xff]   ;;  %v2940_v26 = vld [vmem:[%s3107_s2 + $0x88] ss:$16 sps:$4 sm:$0xff]  }
 0x530   : > { %v1276_v37 = vadd.f32 %v1229_v34, %v3143_v36  ;;  %v1278_v39 = vadd.f32 %v1270_v35, %v3144_v38  ;;  %v1231_v42 = vpop.f32.mrb[34].mxu0  ;;  %v1272_v43 = vpop.f32.mrb[34].mxu1  ;;  %v2946_v27 = vld [vmem:[%s3107_s2 + $0xa4] ss:$16 sps:$4 sm:$0xff]   ;;  %v3147_v34 = vld [vmem:[#allocation15_spill] sm:$0xff] }
 0x531   : > { %v1861_v45 = vmul.f32 -1.442695, %v1275_v28  ;;  %v1232_v46 = vpop.f32.mrb[35].mxu0  ;;  %v1273_v47 = vpop.f32.mrb[35].mxu1  ;;  %v1863_v55 = vmul.f32 -1.442695, %v1277_v32 }
 0x532   : > { %v1862_v48 = vmul.f32 -1.442695, %v1276_v37  ;;  %v2952_v28 = vld [vmem:[%s3107_s2 + $0xac] ss:$16 sps:$4 sm:$0xff]   ;;  %v3146_v31 = vld [vmem:[#allocation14_spill] sm:$0xff]  ;;  %v3148_v35 = vld [vmem:[#allocation16_spill] sm:$0xff] }
 0x533   : > { %2100 = vpow2.f32 %v1861_v45 }
 0x534   : > { %2102 = vpow2.f32 %v1862_v48 }
 0x535   : > { %2104 = vtanh.f32 %v1278_v39 }
 0x536   : > { %2106 = vpow2.f32 %v1863_v55 }
 0x53d   : > { %v2101_v5 = vpop.eup %2100 }
 0x53e   : > { %v1288_v7 = vadd.f32 1.0, %v2101_v5  ;;  %v2103_v9 = vpop.eup %2102 }
 0x53f   : > { %v1289_v8 = vadd.f32 1.0, %v2103_v9  ;;  %v2105_v15 = vpop.eup %2104 }
 0x540   : > { %2108 = vrcp.f32 %v1288_v7  ;;  %v2107_v10 = vpop.eup %2106 }
 0x541   : > { %2110 = vrcp.f32 %v1289_v8  ;;  %v1290_v0 = vadd.f32 1.0, %v2107_v10 }
 0x543   : > { %2112 = vrcp.f32 %v1290_v0  ;;  %v2188_v0 = vld [vmem:[%s3107_s2 + $0xc4] ss:$16 sps:$4 sm:$0xff]  }
 0x54a   : > { %v2109_v11 = vpop.eup %2108 }
 0x54b   : > { %v1299_v12 = vmul.f32 %v2109_v11, %v2105_v15  ;;  %v2111_v21 = vpop.eup %2110 }
 0x54c   : > { %v1298_v18 = vmul.f32 %v2111_v21, %v2778_v62  ;;  %v2904_v62 = vld [vmem:[%s3107_s2 + $0x6c] ss:$16 sps:$4 sm:$0xff]   ;;  %v2187_v21 = vld [vmem:[%s3107_s2 + $0xa8] ss:$16 sps:$4 sm:$0xff]  }
 0x54d   : > { %v2113_v23 = vpop.eup %2112 }
 0x54e   : > { %v2830_v20 = vadd.f32 %v1299_v12, %v1298_v18  ;;  %v2189_v18 = vld [vmem:[%s3107_s2 + $0xcc] ss:$16 sps:$4 sm:$0xff]  }
 0x550   : > { %2114 = vtanh.f32 %v2830_v20 }
 0x55a   : > { %v2115_v51 = vpop.eup %2114 }
 0x55b   : > { %v1302_v16 = vmul.f32 %v2115_v51, %v2113_v23  ;;  %v2191_v23 = vld [vmem:[%s3107_s2 + $0xc8] ss:$16 sps:$4 sm:$0xff]   ;;  %v2192_v51 = vld [vmem:[%s3107_s2 + $0xe4] ss:$16 sps:$4 sm:$0xff]  }
 0x55d   : > { %v1303_v17 = vpack.c.bf16 %v1302_v16, %v1302_v16  ;;  %v2193_v16 = vld [vmem:[%s3107_s2 + $0xec] ss:$16 sps:$4 sm:$0xff]  }
 0x55f   : > { %1337 = vmatmul.mubr.bf16.vlgmr.msra.gmra.mrb[36].mxu0 %v1303_v17  ;;  %1378 = vmatmul.mubr.bf16.vlgmr.msra.gmra.mrb[36].mxu1 %v1303_v17  ;;  %v2194_v17 = vld [vmem:[%s3107_s2 + $0xe0] ss:$16 sps:$4 sm:$0xff]  }
 0x560   : > { %1416 = vmatpush1.bf16.msra.mxu0 %v2836_v40  ;;  %1457 = vmatpush1.bf16.msra.mxu1 %v2842_v44 }
 0x561   : > { %1417 = vmatprep.subr.bf16.mxu0 %v2848_v52  ;;  %1458 = vmatprep.subr.bf16.mxu1 %v2854_v29 }
 0x562   : > { %1447 = vmatprep.mubr.bf16.mxu0 %v3135_v30  ;;  %1488 = vmatprep.mubr.bf16.mxu1 %v3135_v30 }
 0x564   : > { %1418 = vmatpush1.bf16.msra.mxu0 %v2862_v19  ;;  %1459 = vmatpush1.bf16.msra.mxu1 %v2868_v2 }
 0x565   : > { %1419 = vmatprep.subr.bf16.mxu0 %v2874_v13  ;;  %1460 = vmatprep.subr.bf16.mxu1 %v2880_v41 }
 0x568   : > { %1420 = vmatpush1.bf16.msra.mxu0 %v2886_v4  ;;  %1461 = vmatpush1.bf16.msra.mxu1 %v2892_v63 }
 0x569   : > { %1421 = vmatprep.subr.bf16.mxu0 %v2898_v3  ;;  %1462 = vmatprep.subr.bf16.mxu1 %v2904_v62 }
 0x56c   : > { %1422 = vmatpush1.bf16.msra.mxu0 %v2910_v14  ;;  %1463 = vmatpush1.bf16.msra.mxu1 %v2916_v1 }
 0x56d   : > { %1423 = vmatprep.subr.bf16.mxu0 %v2922_v33  ;;  %1464 = vmatprep.subr.bf16.mxu1 %v2928_v6 }
 0x570   : > { %1424 = vmatpush1.bf16.msra.mxu0 %v2934_v25  ;;  %1465 = vmatpush1.bf16.msra.mxu1 %v2940_v26 }
 0x571   : > { %1425 = vmatprep.subr.bf16.mxu0 %v2946_v27  ;;  %1466 = vmatprep.subr.bf16.mxu1 %v2952_v28 }
 0x574   : > { %1426 = vmatpush1.bf16.msra.mxu0 %v2460_v49  ;;  %1467 = vmatpush1.bf16.msra.mxu1 %v2467_v50 }
 0x575   : > { %1427 = vmatprep.subr.bf16.mxu0 %v2476_v53  ;;  %1468 = vmatprep.subr.bf16.mxu1 %v2481_v54  ;;  %v3145_v53 = vld [vmem:[#allocation13_spill] sm:$0xff] }
 0x578   : > { %1428 = vmatpush1.bf16.msra.mxu0 %v2490_v56  ;;  %1469 = vmatpush1.bf16.msra.mxu1 %v2495_v57 }
 0x579   : > { %1429 = vmatprep.subr.bf16.mxu0 %v2502_v58  ;;  %1470 = vmatprep.subr.bf16.mxu1 %v2507_v59 }
 0x57c   : > { %1430 = vmatpush1.bf16.msra.mxu0 %v2516_v60  ;;  %1471 = vmatpush1.bf16.msra.mxu1 %v2521_v61 }
 0x57d   : > { %1526 = vmatprep.subr.bf16.mxu0 %v2816_v22  ;;  %1567 = vmatprep.subr.bf16.mxu1 %v2822_v24 }
 0x632   : > { %v1338_v49 = vpop.f32.mrb[36].mxu0  ;;  %v1379_v50 = vpop.f32.mrb[36].mxu1 }
 0x633   : > { %v1386_v54 = vadd.f32 %v1338_v49, %v3145_v53  ;;  %v1388_v56 = vadd.f32 %v1379_v50, %v3146_v31  ;;  %v1340_v32 = vpop.f32.mrb[37].mxu0  ;;  %v1381_v57 = vpop.f32.mrb[37].mxu1 }
 0x634   : > { %v1387_v58 = vadd.f32 %v1340_v32, %v3147_v34  ;;  %v1389_v59 = vadd.f32 %v1381_v57, %v3148_v35  ;;  %v1342_v36 = vpop.f32.mrb[38].mxu0  ;;  %v1383_v60 = vpop.f32.mrb[38].mxu1 }
 0x635   : > { %v1864_v37 = vmul.f32 -1.442695, %v1386_v54  ;;  %v1343_v61 = vpop.f32.mrb[39].mxu0  ;;  %v1384_v38 = vpop.f32.mrb[39].mxu1  ;;  %v1866_v24 = vmul.f32 -1.442695, %v1388_v56 }
 0x636   : > { %v1865_v22 = vmul.f32 -1.442695, %v1387_v58  ;;  %v1636_v38 = vld [vmem:[%s3109_s4] sm:$0xff] }
 0x637   : > { %2116 = vpow2.f32 %v1864_v37 }
 0x638   : > { %2118 = vpow2.f32 %v1865_v22  ;;  %v1637_v22 = vld [vmem:[%s3109_s4 + $0x8] sm:$0xff] }
 0x639   : > { %2120 = vtanh.f32 %v1389_v59 }
 0x63a   : > { %2122 = vpow2.f32 %v1866_v24  ;;  %v1933_v24 = vpack.c.bf16 %v1637_v22, %v1636_v38 }
 0x641   : > { %v2117_v39 = vpop.eup %2116 }
 0x642   : > { %v1399_v42 = vadd.f32 1.0, %v2117_v39  ;;  %v2119_v43 = vpop.eup %2118  ;;  %v2221_v39 = vmov 0.0|0.0  }
 0x643   : > { %v1400_v45 = vadd.f32 1.0, %v2119_v43  ;;  %v2121_v46 = vpop.eup %2120  ;;  %v1639_v43 = vld [vmem:[%s3109_s4 + $0x18] sm:$0xff] }
 0x644   : > { %2124 = vrcp.f32 %v1399_v42  ;;  %v2123_v47 = vpop.eup %2122  ;;  %v1638_v42 = vld [vmem:[%s3109_s4 + $0x10] sm:$0xff] }
 0x645   : > { %2126 = vrcp.f32 %v1400_v45  ;;  %v1401_v7 = vadd.f32 1.0, %v2123_v47  ;;  %v1936_v45 = vpack.c.bf16 %v1639_v43, %v1638_v42  ;;  %v1641_v47 = vld [vmem:[%s3109_s4 + $0x28] sm:$0xff] }
 0x647   : > { %2128 = vrcp.f32 %v1401_v7 }
 0x64e   : > { %v2125_v48 = vpop.eup %2124 }
 0x64f   : > { %v1410_v55 = vmul.f32 %v2125_v48, %v2121_v46  ;;  %v2127_v5 = vpop.eup %2126  ;;  %v1640_v46 = vld [vmem:[%s3109_s4 + $0x20] sm:$0xff] }
 0x650   : > { %v1409_v9 = vmul.f32 %v2127_v5, %v2830_v20  ;;  %v2190_v20 = vld [vmem:[%s3107_s2 + $0xc0] ss:$16 sps:$4 sm:$0xff]   ;;  %v1939_v48 = vpack.c.bf16 %v1641_v47, %v1640_v46  ;;  %v1643_v5 = vld [vmem:[%s3109_s4 + $0x38] sm:$0xff] }
 0x651   : > { %v2129_v15 = vpop.eup %2128 }
 0x652   : > { %v2972_v8 = vadd.f32 %v1410_v55, %v1409_v9  ;;  %v1642_v55 = vld [vmem:[%s3109_s4 + $0x30] sm:$0xff]  ;;  %v1644_v9 = vld [vmem:[%s3109_s4 + $0x40] sm:$0xff] }
 0x653   : > { %v1942_v7 = vpack.c.bf16 %v1643_v5, %v1642_v55 }
 0x654   : > { %2130 = vtanh.f32 %v2972_v8 }
 0x65e   : > { %v2131_v10 = vpop.eup %2130 }
 0x65f   : > { %v1413_v11 = vmul.f32 %v2131_v10, %v2129_v15  ;;  %v1646_v10 = vld [vmem:[%s3109_s4 + $0x50] sm:$0xff] }
 0x661   : > { %v1414_v12 = vpack.c.bf16 %v1413_v11, %v1413_v11  ;;  %v1647_v11 = vld [vmem:[%s3109_s4 + $0x58] sm:$0xff] }
 0x663   : > { %1448 = vmatmul.mubr.bf16.vlgmr.msra.gmra.mrb[40].mxu0 %v1414_v12  ;;  %1489 = vmatmul.mubr.bf16.vlgmr.msra.gmra.mrb[40].mxu1 %v1414_v12  ;;  %v1948_v12 = vpack.c.bf16 %v1647_v11, %v1646_v10 }
 0x664   : > { %1527 = vmatpush1.bf16.msra.mxu0 %v2836_v40  ;;  %1568 = vmatpush1.bf16.msra.mxu1 %v2842_v44  ;;  %v2195_v40 = vld [vmem:[%s3107_s2 + $0xe8] ss:$16 sps:$4 sm:$0xff]  }
 0x665   : > { %1528 = vmatprep.subr.bf16.mxu0 %v2848_v52  ;;  %1569 = vmatprep.subr.bf16.mxu1 %v2854_v29  ;;  %v3149_v29 = vld [vmem:[#allocation17_spill] sm:$0xff] }
 0x666   : > { %1558 = vmatprep.mubr.bf16.mxu0 %v3135_v30  ;;  %1599 = vmatprep.mubr.bf16.mxu1 %v3135_v30  ;;  %v2186_v30 = vld [vmem:[%s3107_s2 + $0xa0] ss:$16 sps:$4 sm:$0xff]  }
 0x668   : > { %1529 = vmatpush1.bf16.msra.mxu0 %v2862_v19  ;;  %1570 = vmatpush1.bf16.msra.mxu1 %v2868_v2  ;;  %v3150_v2 = vld [vmem:[#allocation18_spill] sm:$0xff] }
 0x669   : > { %1530 = vmatprep.subr.bf16.mxu0 %v2874_v13  ;;  %1571 = vmatprep.subr.bf16.mxu1 %v2880_v41 }
 0x66c   : > { %1531 = vmatpush1.bf16.msra.mxu0 %v2886_v4  ;;  %1572 = vmatpush1.bf16.msra.mxu1 %v2892_v63  ;;  %v3151_v63 = vld [vmem:[#allocation19_spill] sm:$0xff] }
 0x66d   : > { %1532 = vmatprep.subr.bf16.mxu0 %v2898_v3  ;;  %1573 = vmatprep.subr.bf16.mxu1 %v2904_v62  ;;  %v3152_v62 = vld [vmem:[#allocation20_spill] sm:$0xff] }
 0x670   : > { %1533 = vmatpush1.bf16.msra.mxu0 %v2910_v14  ;;  %1574 = vmatpush1.bf16.msra.mxu1 %v2916_v1 }
 0x671   : > { %1534 = vmatprep.subr.bf16.mxu0 %v2922_v33  ;;  %1575 = vmatprep.subr.bf16.mxu1 %v2928_v6 }
 0x674   : > { %1535 = vmatpush1.bf16.msra.mxu0 %v2934_v25  ;;  %1576 = vmatpush1.bf16.msra.mxu1 %v2940_v26 }
 0x675   : > { %1536 = vmatprep.subr.bf16.mxu0 %v2946_v27  ;;  %1577 = vmatprep.subr.bf16.mxu1 %v2952_v28 }
 0x678   : > { %1537 = vmatpush1.bf16.msra.mxu0 %v2186_v30  ;;  %1578 = vmatpush1.bf16.msra.mxu1 %v2187_v21  ;;  %v1648_v30 = vld [vmem:[%s3109_s4 + $0x60] sm:$0xff]  ;;  %v1649_v21 = vld [vmem:[%s3109_s4 + $0x68] sm:$0xff] }
 0x679   : > { %1538 = vmatprep.subr.bf16.mxu0 %v2188_v0  ;;  %1579 = vmatprep.subr.bf16.mxu1 %v2189_v18  ;;  %v2223_v0 = vmov 0.0   ;;  %v1951_v18 = vpack.c.bf16 %v1649_v21, %v1648_v30 }
 0x67c   : > { %1539 = vmatpush1.bf16.msra.mxu0 %v2190_v20  ;;  %1580 = vmatpush1.bf16.msra.mxu1 %v2191_v23  ;;  %v1650_v20 = vld [vmem:[%s3109_s4 + $0x70] sm:$0xff]  ;;  %v1651_v23 = vld [vmem:[%s3109_s4 + $0x78] sm:$0xff] }
 0x67d   : > { %1540 = vmatprep.subr.bf16.mxu0 %v2192_v51  ;;  %1581 = vmatprep.subr.bf16.mxu1 %v2193_v16  ;;  %v1954_v51 = vpack.c.bf16 %v1651_v23, %v1650_v20 }
 0x680   : > { %1541 = vmatpush1.bf16.msra.mxu0 %v2194_v17  ;;  %1582 = vmatpush1.bf16.msra.mxu1 %v2195_v40  ;;  %v3153_v40 = vld [vmem:[#allocation21_spill] sm:$0xff] }
 0x681   : > { %1932 = vmatprep.subr.bf16.mxu0 %v2221_v39 }
 0x736   : > { %v1449_v44 = vpop.f32.mrb[40].mxu0  ;;  %v1490_v52 = vpop.f32.mrb[40].mxu1 }
 0x737   : > { %v1497_v19 = vadd.f32 %v1449_v44, %v3149_v29  ;;  %v1499_v13 = vadd.f32 %v1490_v52, %v3150_v2  ;;  %v1451_v41 = vpop.f32.mrb[41].mxu0  ;;  %v1492_v4 = vpop.f32.mrb[41].mxu1  ;;  %v3154_v52 = vld [vmem:[#allocation22_spill] sm:$0xff] }
 0x738   : > { %v1498_v3 = vadd.f32 %v1451_v41, %v3151_v63  ;;  %v1500_v14 = vadd.f32 %v1492_v4, %v3152_v62  ;;  %v1453_v1 = vpop.f32.mrb[42].mxu0  ;;  %v1494_v33 = vpop.f32.mrb[42].mxu1  ;;  %v3156_v4 = vld [vmem:[#allocation24_spill] sm:$0xff] }
 0x739   : > { %v1867_v6 = vmul.f32 -1.442695, %v1497_v19  ;;  %v1454_v25 = vpop.f32.mrb[43].mxu0  ;;  %v1495_v26 = vpop.f32.mrb[43].mxu1  ;;  %v1869_v28 = vmul.f32 -1.442695, %v1499_v13 }
 0x73a   : > { %v1868_v27 = vmul.f32 -1.442695, %v1498_v3  ;;  %v3155_v13 = vld [vmem:[#allocation23_spill] sm:$0xff] }
 0x73b   : > { %2132 = vpow2.f32 %v1867_v6 }
 0x73c   : > { %2134 = vpow2.f32 %v1868_v27 }
 0x73d   : > { %2136 = vtanh.f32 %v1500_v14 }
 0x73e   : > { %2138 = vpow2.f32 %v1869_v28 }
 0x745   : > { %v2133_v49 = vpop.eup %2132 }
 0x746   : > { %v1510_v50 = vadd.f32 1.0, %v2133_v49  ;;  %v2135_v53 = vpop.eup %2134 }
 0x747   : > { %v1511_v54 = vadd.f32 1.0, %v2135_v53  ;;  %v2137_v31 = vpop.eup %2136 }
 0x748   : > { %2140 = vrcp.f32 %v1510_v50  ;;  %v2139_v56 = vpop.eup %2138 }
 0x749   : > { %2142 = vrcp.f32 %v1511_v54  ;;  %v1512_v58 = vadd.f32 1.0, %v2139_v56 }
 0x74b   : > { %2144 = vrcp.f32 %v1512_v58 }
 0x752   : > { %v2141_v32 = vpop.eup %2140 }
 0x753   : > { %v1521_v57 = vmul.f32 %v2141_v32, %v2137_v31  ;;  %v2143_v34 = vpop.eup %2142 }
 0x754   : > { %v1520_v35 = vmul.f32 %v2143_v34, %v2972_v8  ;;  %v1645_v8 = vld [vmem:[%s3109_s4 + $0x48] sm:$0xff] }
 0x755   : > { %v2145_v36 = vpop.eup %2144  ;;  %v1945_v15 = vpack.c.bf16 %v1645_v8, %v1644_v9 }
 0x756   : > { %v3032_v59 = vadd.f32 %v1521_v57, %v1520_v35 }
 0x758   : > { %2146 = vtanh.f32 %v3032_v59 }
 0x762   : > { %v2147_v60 = vpop.eup %2146 }
 0x763   : > { %v1524_v37 = vmul.f32 %v2147_v60, %v2145_v36  ;;  %v1873_v60 = vld [vmem:[#allocation2] ss:$0 sm:$0xff] }
 0x765   : > { %v1525_v61 = vpack.c.bf16 %v1524_v37, %v1524_v37 }
 0x767   : > { %1559 = vmatmul.mubr.bf16.vlgmr.msra.gmra.mrb[44].mxu0 %v1525_v61  ;;  %1600 = vmatmul.mubr.bf16.vlgmr.msra.gmra.mrb[44].mxu1 %v1525_v61 }
 0x768   : > { %1934 = vmatpush3.bf16.msra.mxu0 %v1933_v24  ;;  %1929 = vmatprep.mubr.msk.f32.mxu0 %vm2222_vm2, %v2223_v0 }
 0x769   : > { %1935 = vmatprep.subr.bf16.mxu0 %v2221_v39 }
 0x76c   : > { %1937 = vmatpush3.bf16.msra.mxu0 %v1936_v45 }
 0x76d   : > { %1938 = vmatprep.subr.bf16.mxu0 %v2221_v39 }
 0x770   : > { %1940 = vmatpush3.bf16.msra.mxu0 %v1939_v48 }
 0x771   : > { %1941 = vmatprep.subr.bf16.mxu0 %v2221_v39 }
 0x774   : > { %1943 = vmatpush3.bf16.msra.mxu0 %v1942_v7 }
 0x775   : > { %1944 = vmatprep.subr.bf16.mxu0 %v2221_v39 }
 0x778   : > { %1946 = vmatpush3.bf16.msra.mxu0 %v1945_v15 }
 0x779   : > { %1947 = vmatprep.subr.bf16.mxu0 %v2221_v39 }
 0x77c   : > { %1949 = vmatpush3.bf16.msra.mxu0 %v1948_v12 }
 0x77d   : > { %1950 = vmatprep.subr.bf16.mxu0 %v2221_v39 }
 0x780   : > { %1952 = vmatpush3.bf16.msra.mxu0 %v1951_v18 }
 0x781   : > { %1953 = vmatprep.subr.bf16.mxu0 %v2221_v39 }
 0x784   : > { %1955 = vmatpush3.bf16.msra.mxu0 %v1954_v51 }
 0x83a   : > { %v1560_v16 = vpop.f32.mrb[44].mxu0  ;;  %v1601_v17 = vpop.f32.mrb[44].mxu1 }
 0x83b   : > { %v1608_v44 = vadd.f32 %v1560_v16, %v3153_v40  ;;  %v1610_v29 = vadd.f32 %v1601_v17, %v3154_v52  ;;  %v1562_v19 = vpop.f32.mrb[45].mxu0  ;;  %v1603_v2 = vpop.f32.mrb[45].mxu1 }
 0x83c   : > { %v1609_v41 = vadd.f32 %v1562_v19, %v3155_v13  ;;  %v1611_v63 = vadd.f32 %v1603_v2, %v3156_v4  ;;  %v1564_v3 = vpop.f32.mrb[46].mxu0  ;;  %v1605_v62 = vpop.f32.mrb[46].mxu1 }
 0x83d   : > { %v1870_v14 = vmul.f32 -1.442695, %v1608_v44  ;;  %v1565_v1 = vpop.f32.mrb[47].mxu0  ;;  %v1606_v33 = vpop.f32.mrb[47].mxu1  ;;  %v1872_v25 = vmul.f32 -1.442695, %v1610_v29 }
 0x83e   : > { %v1871_v6 = vmul.f32 -1.442695, %v1609_v41 }
 0x83f   : > { %2148 = vpow2.f32 %v1870_v14 }
 0x840   : > { %2150 = vpow2.f32 %v1871_v6 }
 0x841   : > { %2152 = vtanh.f32 %v1611_v63 }
 0x842   : > { %2154 = vpow2.f32 %v1872_v25 }
 0x849   : > { %v2149_v26 = vpop.eup %2148 }
 0x84a   : > { %v1621_v27 = vadd.f32 1.0, %v2149_v26  ;;  %v2151_v28 = vpop.eup %2150 }
 0x84b   : > { %v1622_v49 = vadd.f32 1.0, %v2151_v28  ;;  %v2153_v50 = vpop.eup %2152 }
 0x84c   : > { %2156 = vrcp.f32 %v1621_v27  ;;  %v2155_v53 = vpop.eup %2154 }
 0x84d   : > { %2158 = vrcp.f32 %v1622_v49  ;;  %v1623_v32 = vadd.f32 1.0, %v2155_v53 }
 0x84f   : > { %2160 = vrcp.f32 %v1623_v32 }
 0x856   : > { %v2157_v54 = vpop.eup %2156 }
 0x857   : > { %v1632_v31 = vmul.f32 %v2157_v54, %v2153_v50  ;;  %v2159_v56 = vpop.eup %2158 }
 0x858   : > { %v1631_v57 = vmul.f32 %v2159_v56, %v3032_v59 }
 0x859   : > { %v2161_v58 = vpop.eup %2160 }
 0x85a   : > { %v1633_v34 = vadd.f32 %v1632_v31, %v1631_v57 }
 0x85c   : > { %2162 = vtanh.f32 %v1633_v34 }
 0x866   : > { %v2163_v35 = vpop.eup %2162 }
 0x867   : > { %v1635_v36 = vmul.f32 %v2163_v35, %v2161_v58 }
 0x869   : > { %1930 = vmatmul.mubr.f32.vlgmr.msra.gmra.mrb[48].mxu0 %v1635_v36 }
 0x93c   : > { %v1725_v37 = vpop.f32.mrb[48].mxu0 }
 0x93d   : > { %v1726_v59 = vadd.f32 %v1873_v60, %v1725_v37  ;;  %v1931_v61 = vpop.f32.mrb[49].mxu0 }
 0x93f   : > { %1730 = vst.msk [vmem:[%s313_s7] sm:$0xff] %vm1729_vm3, %v1726_v59 }
 0x940 PF: > { %p15_p9 = scmp.ge.s32.totalorder %s2279_s26, 4   ;;  %s3157_s23 = smov %s2214_s24 }
 0x941   : > { %s3158_s24 = smov %s2288_s29  ;;  %s3159_s25 = smov %s2279_s26 }
 0x942   :  { %17 = sbr.rel (!%p15_p9) target bundleno = 5 (0x5), region = 117 }

</bundles_post_ra>
